<compile_context>
chip_gen: v7x
topology: tpu7x:2x2x1
jax: 0.10.0
libtpu: 0.0.40
codegen_flags: <defaults>
</compile_context>

<pallas_src>
import functools
import math

import jax
import jax.numpy as jnp
from jax.experimental import pallas as pl
from jax.experimental.pallas import tpu as pltpu


def _round_up(v, m):
    return (v + m - 1) // m * m


def _cdiv(a, b):
    return (a + b - 1) // b


def _make_conv_taps_kernel(ksize, tile_rows, wout_r):
    """Kernel: conv as K*K tap-GEMMs over a halo'd input tile, bias-initialized f32 acc."""
    m_t = tile_rows * wout_r

    def kernel(x_ref, w_ref, b_ref, o_ref):
        # x_ref: (tile_rows+K-1, wout_r+K-1, Cin)  halo'd padded-input tile (VMEM)
        # w_ref: (K*K, Cin, Npad)                  tap-major weights (resident, fetched once)
        # b_ref: (1, Npad) float32                 bias
        # o_ref: (m_t, Npad)                       output tile (lane-dense)
        npad = o_ref.shape[-1]
        cin = x_ref.shape[-1]
        # Bias-initialized accumulator: saves the zero-init pass and a separate bias add.
        acc = jnp.broadcast_to(b_ref[...], (m_t, npad)).astype(jnp.float32)
        for ky in range(ksize):
            for kx in range(ksize):
                xs = x_ref[ky:ky + tile_rows, kx:kx + wout_r, :]   # (rows, W, Cin) window
                xs = xs.reshape(m_t, cin)                          # layout-free: W % 8 == 0
                acc = acc + jnp.dot(xs, w_ref[ky * ksize + kx],
                                    preferred_element_type=jnp.float32)
        o_ref[...] = acc.astype(o_ref.dtype)

    return kernel


def _vmem_limit_bytes():
    """Generation-aware scoped-VMEM request (v5e/v6e: 128 MiB physical, v7x: 64 MiB)."""
    try:
        cap = int(pltpu.get_tpu_info().vmem_capacity_bytes)
    except Exception:
        cap = 64 * 1024 * 1024            # conservative fallback = v7x per-core VMEM
    return int(cap * 0.70)


def _tile_vmem_bytes(tile_rows, ksize, wout_r, cin, npad, itemsize):
    """Rough per-step VMEM: double-buffered x/out blocks, resident weights, f32 acc."""
    hb = tile_rows + ksize - 1
    wp = wout_r + ksize - 1
    m_t = tile_rows * wout_r
    cin_v = _round_up(cin, 128)           # lane padding of the (minor) channel dim in VMEM
    x_blk = hb * _round_up(wp, 8) * cin_v * itemsize
    o_blk = m_t * npad * itemsize
    w_blk = ksize * ksize * _round_up(cin, 8) * npad * itemsize
    acc = m_t * npad * 4
    xs_tmp = m_t * cin_v * itemsize
    return 2 * (x_blk + o_blk) + 2 * w_blk + acc + 2 * xs_tmp + npad * 4


@functools.partial(jax.jit, static_argnames=("scale", "padding", "compute_dtype"))
def up_pixel_shuffle(x, weight, bias, *, scale=1, padding=None, compute_dtype=None):
    """x: (N, Cin, H, W); weight: (Cout*scale^2, Cin, K, K) (PyTorch); bias: (Cout*scale^2,)."""
    n_b, c_in, h_in, w_in = x.shape
    n_out, c_in_w, kh, kw = weight.shape
    assert c_in_w == c_in and kh == kw     # TODO(synk): groups > 1 unsupported
    ksize = kh
    pad = ksize // 2 if padding is None else padding
    h_out = h_in + 2 * pad - ksize + 1
    w_out = w_in + 2 * pad - ksize + 1
    assert n_out % (scale * scale) == 0
    c_out = n_out // (scale * scale)

    cdt = jnp.dtype(x.dtype if compute_dtype is None else compute_dtype)
    itemsize = cdt.itemsize
    out_dtype = x.dtype

    npad = _round_up(max(n_out, 128), 128)     # lane-dense output / weight N dim
    wout_r = _round_up(w_out, 8)               # clean (rows, W, C) -> (rows*W, C) collapse

    # ---- pick the row tile so x tile + out tile + W + f32 acc fit the VMEM budget ----
    vmem_limit = _vmem_limit_bytes()
    budget = int(vmem_limit * 0.8)             # headroom for compiler temporaries
    tile_rows = max(1, h_out)
    while tile_rows > 1 and _tile_vmem_bytes(tile_rows, ksize, wout_r,
                                             c_in, npad, itemsize) > budget:
        tile_rows = max(1, tile_rows // 2)
    row_tiles = _cdiv(h_out, tile_rows)
    tile_rows = _cdiv(h_out, row_tiles)        # even-ish row blocks

    hb = tile_rows + ksize - 1                 # halo'd rows per block
    wp = wout_r + ksize - 1                    # halo'd (padded) width
    h_rows_total = row_tiles * tile_rows + ksize - 1

    # ---- layout-only prep: one pass over x (transpose+pad fuse under jit); no im2col ----
    x_nhwc = jnp.transpose(x, (0, 2, 3, 1)).astype(cdt)
    xp = jnp.pad(x_nhwc, ((0, 0),
                          (pad, h_rows_total - (h_in + pad)),
                          (pad, wp - (w_in + pad)),
                          (0, 0)))
    if row_tiles == 1:
        xb = xp[:, None]                       # free: no halo replication needed
    else:
        # Halo-replicated row blocks: only (K-1)/tile_rows extra rows, one extra x pass.
        xb = jnp.stack([xp[:, t * tile_rows: t * tile_rows + hb]
                        for t in range(row_tiles)], axis=1)
    xb = xb.reshape(n_b * row_tiles, hb, wp, c_in)

    # weight (O, Cin, K, K) -> (K*K, Cin, Npad) tap-major; native/bf16 operands, f32 accum.
    w_mat = jnp.transpose(weight, (2, 3, 1, 0)).reshape(ksize * ksize, c_in, n_out)
    w_mat = jnp.pad(w_mat, ((0, 0), (0, 0), (0, npad - n_out))).astype(cdt)
    b_mat = jnp.pad(bias.astype(jnp.float32), (0, npad - n_out)).reshape(1, npad)

    grid = (n_b * row_tiles,)
    m_t = tile_rows * wout_r

    cost = pl.CostEstimate(
        flops=2 * grid[0] * m_t * c_in * ksize * ksize * npad,
        transcendentals=0,
        bytes_accessed=(xb.size + w_mat.size) * itemsize + b_mat.size * 4
                       + grid[0] * m_t * npad * jnp.dtype(out_dtype).itemsize,
    )

    y = pl.pallas_call(
        _make_conv_taps_kernel(ksize, tile_rows, wout_r),
        out_shape=jax.ShapeDtypeStruct((grid[0], m_t, npad), out_dtype),
        grid=grid,
        in_specs=[
            pl.BlockSpec((None, hb, wp, c_in), lambda g: (g, 0, 0, 0)),      # halo'd x tile
            pl.BlockSpec((ksize * ksize, c_in, npad), lambda g: (0, 0, 0)),  # resident W
            pl.BlockSpec((1, npad), lambda g: (0, 0)),                       # bias (f32)
        ],
        out_specs=pl.BlockSpec((None, m_t, npad), lambda g: (g, 0, 0)),
        compiler_params=pltpu.CompilerParams(
            dimension_semantics=("parallel",),
            vmem_limit_bytes=vmem_limit,
        ),
        cost_estimate=cost,
    )(xb, w_mat, b_mat)

    # ---- PixelShuffle + NCHW: a single fused slice + transpose pass over the output ----
    y = y.reshape(n_b, row_tiles * tile_rows, wout_r, npad)[:, :h_out, :w_out, :n_out]
    y = y.reshape(n_b, h_out, w_out, c_out, scale, scale)
    y = y.transpose(0, 3, 1, 4, 2, 5).reshape(n_b, c_out, h_out * scale, w_out * scale)
    return y


def _reference(x, weight, bias, *, scale, padding=None):
    """Independent pure-JAX conv2d(+bias) + PixelShuffle, written as per-tap dots."""
    n_b, c_in, h_in, w_in = x.shape
    n_out, _, ksize, _ = weight.shape
    pad = ksize // 2 if padding is None else padding
    h_out = h_in + 2 * pad - ksize + 1
    w_out = w_in + 2 * pad - ksize + 1
    xp = jnp.pad(x, ((0, 0), (0, 0), (pad, pad), (pad, pad)))
    acc = jnp.zeros((n_b, h_out, w_out, n_out), jnp.float32)
    for ky in range(ksize):
        for kx in range(ksize):
            patch = xp[:, :, ky:ky + h_out, kx:kx + w_out].transpose(0, 2, 3, 1)  # NHWC
            acc = acc + jnp.dot(patch, weight[:, :, ky, kx].T)
    acc = acc + bias
    c_out = n_out // (scale * scale)
    y = acc.reshape(n_b, h_out, w_out, c_out, scale, scale)
    return y.transpose(0, 3, 1, 4, 2, 5).reshape(n_b, c_out, h_out * scale, w_out * scale)


if __name__ == "__main__":
    # Small shapes consistent with the module: 3x3 conv, scale=2 upsampling.
    batch, in_ch, out_ch, ksize, scale, hw = 2, 16, 32, 3, 2, 16
    conv_out = out_ch * scale * scale      # 128 -> lane-dense output, no channel padding

    key = jax.random.PRNGKey(0)
    kx_, kw_, kb_ = jax.random.split(key, 3)

    x = jax.random.normal(kx_, (batch, in_ch, hw, hw), dtype=jnp.float32)

    # Deterministic synthetic Conv2d parameters (PyTorch init: uniform +-1/sqrt(fan_in)).
    fan_in = in_ch * ksize * ksize
    bound = 1.0 / math.sqrt(fan_in)
    weight = jax.random.uniform(kw_, (conv_out, in_ch, ksize, ksize),
                                minval=-bound, maxval=bound, dtype=jnp.float32)
    bias = jax.random.uniform(kb_, (conv_out,), minval=-bound, maxval=bound,
                              dtype=jnp.float32)

    out = up_pixel_shuffle(x, weight, bias, scale=scale)
    out = jax.block_until_ready(out)

    ref = _reference(x, weight, bias, scale=scale)
    assert out.shape == (batch, out_ch, hw * scale, hw * scale), out.shape
    assert ref.shape == out.shape
    max_err = float(jnp.max(jnp.abs(out - ref)))
    assert jnp.allclose(out, ref, atol=1e-4, rtol=1e-4), f"mismatch vs reference: {max_err}"

    print("KERNEL_OK")
</pallas_src>

<mosaic_0001>
module attributes {stable_mosaic.version = 11 : i64} {
  func.func @kernel(%arg0: i32, %arg1: memref<1x18x18x16xf32, #tpu.memory_space<vmem>>, %arg2: memref<9x16x128xf32, #tpu.memory_space<vmem>>, %arg3: memref<1x128xf32, #tpu.memory_space<vmem>>, %arg4: memref<1x256x128xf32, #tpu.memory_space<vmem>>) attributes {dimension_semantics = [#tpu.dimension_semantics<parallel>], iteration_bounds = array<i64: 2>, scalar_prefetch = 0 : i64, scratch_operands = 0 : i64, tpu.core_type = #tpu.core_type<tc>, window_params = [{transform_indices = @transform_0, window_bounds = array<i64: 1, 18, 18, 16>}, {pipeline_mode = #tpu.pipeline_mode<synchronous>, transform_indices = @transform_1, window_bounds = array<i64: 9, 16, 128>}, {pipeline_mode = #tpu.pipeline_mode<synchronous>, transform_indices = @transform_2, window_bounds = array<i64: 1, 128>}, {transform_indices = @transform_3, window_bounds = array<i64: 1, 256, 128>}]} {
    %c0 = arith.constant 0 : index
    %c0_0 = arith.constant 0 : index
    %0 = vector.load %arg3[%c0, %c0_0] : memref<1x128xf32, #tpu.memory_space<vmem>>, vector<1x128xf32>
    %1 = vector.shape_cast %0 : vector<1x128xf32> to vector<1x128xf32>
    %2 = vector.broadcast %1 : vector<1x128xf32> to vector<256x128xf32>
    %c0_1 = arith.constant 0 : index
    %c0_2 = arith.constant 0 : index
    %c0_3 = arith.constant 0 : index
    %c0_4 = arith.constant 0 : index
    %3 = vector.load %arg1[%c0_1, %c0_2, %c0_3, %c0_4] : memref<1x18x18x16xf32, #tpu.memory_space<vmem>>, vector<1x16x16x16xf32>
    %4 = vector.shape_cast %3 : vector<1x16x16x16xf32> to vector<16x16x16xf32>
    %5 = vector.shape_cast %4 : vector<16x16x16xf32> to vector<256x16xf32>
    %c0_5 = arith.constant 0 : index
    %c0_6 = arith.constant 0 : index
    %c0_7 = arith.constant 0 : index
    %6 = vector.load %arg2[%c0_5, %c0_6, %c0_7] : memref<9x16x128xf32, #tpu.memory_space<vmem>>, vector<1x16x128xf32>
    %7 = vector.shape_cast %6 : vector<1x16x128xf32> to vector<16x128xf32>
    %cst = arith.constant dense<0.000000e+00> : vector<256x128xf32>
    %8 = tpu.matmul %5, %7, %cst {dimension_numbers = #tpu.dot_dimension_numbers<[1], [0], [0], [1], [0, 0, 1, 1], [], []>} : vector<256x16xf32>, vector<16x128xf32>, vector<256x128xf32> -> vector<256x128xf32>
    %9 = arith.addf %2, %8 : vector<256x128xf32>
    %c0_8 = arith.constant 0 : index
    %c0_9 = arith.constant 0 : index
    %c1 = arith.constant 1 : index
    %c0_10 = arith.constant 0 : index
    %10 = vector.load %arg1[%c0_8, %c0_9, %c1, %c0_10] : memref<1x18x18x16xf32, #tpu.memory_space<vmem>>, vector<1x16x16x16xf32>
    %11 = vector.shape_cast %10 : vector<1x16x16x16xf32> to vector<16x16x16xf32>
    %12 = vector.shape_cast %11 : vector<16x16x16xf32> to vector<256x16xf32>
    %c1_11 = arith.constant 1 : index
    %c0_12 = arith.constant 0 : index
    %c0_13 = arith.constant 0 : index
    %13 = vector.load %arg2[%c1_11, %c0_12, %c0_13] : memref<9x16x128xf32, #tpu.memory_space<vmem>>, vector<1x16x128xf32>
    %14 = vector.shape_cast %13 : vector<1x16x128xf32> to vector<16x128xf32>
    %cst_14 = arith.constant dense<0.000000e+00> : vector<256x128xf32>
    %15 = tpu.matmul %12, %14, %cst_14 {dimension_numbers = #tpu.dot_dimension_numbers<[1], [0], [0], [1], [0, 0, 1, 1], [], []>} : vector<256x16xf32>, vector<16x128xf32>, vector<256x128xf32> -> vector<256x128xf32>
    %16 = arith.addf %9, %15 : vector<256x128xf32>
    %c0_15 = arith.constant 0 : index
    %c0_16 = arith.constant 0 : index
    %c2 = arith.constant 2 : index
    %c0_17 = arith.constant 0 : index
    %17 = vector.load %arg1[%c0_15, %c0_16, %c2, %c0_17] : memref<1x18x18x16xf32, #tpu.memory_space<vmem>>, vector<1x16x16x16xf32>
    %18 = vector.shape_cast %17 : vector<1x16x16x16xf32> to vector<16x16x16xf32>
    %19 = vector.shape_cast %18 : vector<16x16x16xf32> to vector<256x16xf32>
    %c2_18 = arith.constant 2 : index
    %c0_19 = arith.constant 0 : index
    %c0_20 = arith.constant 0 : index
    %20 = vector.load %arg2[%c2_18, %c0_19, %c0_20] : memref<9x16x128xf32, #tpu.memory_space<vmem>>, vector<1x16x128xf32>
    %21 = vector.shape_cast %20 : vector<1x16x128xf32> to vector<16x128xf32>
    %cst_21 = arith.constant dense<0.000000e+00> : vector<256x128xf32>
    %22 = tpu.matmul %19, %21, %cst_21 {dimension_numbers = #tpu.dot_dimension_numbers<[1], [0], [0], [1], [0, 0, 1, 1], [], []>} : vector<256x16xf32>, vector<16x128xf32>, vector<256x128xf32> -> vector<256x128xf32>
    %23 = arith.addf %16, %22 : vector<256x128xf32>
    %c0_22 = arith.constant 0 : index
    %c1_23 = arith.constant 1 : index
    %c0_24 = arith.constant 0 : index
    %c0_25 = arith.constant 0 : index
    %24 = vector.load %arg1[%c0_22, %c1_23, %c0_24, %c0_25] : memref<1x18x18x16xf32, #tpu.memory_space<vmem>>, vector<1x16x16x16xf32>
    %25 = vector.shape_cast %24 : vector<1x16x16x16xf32> to vector<16x16x16xf32>
    %26 = vector.shape_cast %25 : vector<16x16x16xf32> to vector<256x16xf32>
    %c3 = arith.constant 3 : index
    %c0_26 = arith.constant 0 : index
    %c0_27 = arith.constant 0 : index
    %27 = vector.load %arg2[%c3, %c0_26, %c0_27] : memref<9x16x128xf32, #tpu.memory_space<vmem>>, vector<1x16x128xf32>
    %28 = vector.shape_cast %27 : vector<1x16x128xf32> to vector<16x128xf32>
    %cst_28 = arith.constant dense<0.000000e+00> : vector<256x128xf32>
    %29 = tpu.matmul %26, %28, %cst_28 {dimension_numbers = #tpu.dot_dimension_numbers<[1], [0], [0], [1], [0, 0, 1, 1], [], []>} : vector<256x16xf32>, vector<16x128xf32>, vector<256x128xf32> -> vector<256x128xf32>
    %30 = arith.addf %23, %29 : vector<256x128xf32>
    %c0_29 = arith.constant 0 : index
    %c1_30 = arith.constant 1 : index
    %c1_31 = arith.constant 1 : index
    %c0_32 = arith.constant 0 : index
    %31 = vector.load %arg1[%c0_29, %c1_30, %c1_31, %c0_32] : memref<1x18x18x16xf32, #tpu.memory_space<vmem>>, vector<1x16x16x16xf32>
    %32 = vector.shape_cast %31 : vector<1x16x16x16xf32> to vector<16x16x16xf32>
    %33 = vector.shape_cast %32 : vector<16x16x16xf32> to vector<256x16xf32>
    %c4 = arith.constant 4 : index
    %c0_33 = arith.constant 0 : index
    %c0_34 = arith.constant 0 : index
    %34 = vector.load %arg2[%c4, %c0_33, %c0_34] : memref<9x16x128xf32, #tpu.memory_space<vmem>>, vector<1x16x128xf32>
    %35 = vector.shape_cast %34 : vector<1x16x128xf32> to vector<16x128xf32>
    %cst_35 = arith.constant dense<0.000000e+00> : vector<256x128xf32>
    %36 = tpu.matmul %33, %35, %cst_35 {dimension_numbers = #tpu.dot_dimension_numbers<[1], [0], [0], [1], [0, 0, 1, 1], [], []>} : vector<256x16xf32>, vector<16x128xf32>, vector<256x128xf32> -> vector<256x128xf32>
    %37 = arith.addf %30, %36 : vector<256x128xf32>
    %c0_36 = arith.constant 0 : index
    %c1_37 = arith.constant 1 : index
    %c2_38 = arith.constant 2 : index
    %c0_39 = arith.constant 0 : index
    %38 = vector.load %arg1[%c0_36, %c1_37, %c2_38, %c0_39] : memref<1x18x18x16xf32, #tpu.memory_space<vmem>>, vector<1x16x16x16xf32>
    %39 = vector.shape_cast %38 : vector<1x16x16x16xf32> to vector<16x16x16xf32>
    %40 = vector.shape_cast %39 : vector<16x16x16xf32> to vector<256x16xf32>
    %c5 = arith.constant 5 : index
    %c0_40 = arith.constant 0 : index
    %c0_41 = arith.constant 0 : index
    %41 = vector.load %arg2[%c5, %c0_40, %c0_41] : memref<9x16x128xf32, #tpu.memory_space<vmem>>, vector<1x16x128xf32>
    %42 = vector.shape_cast %41 : vector<1x16x128xf32> to vector<16x128xf32>
    %cst_42 = arith.constant dense<0.000000e+00> : vector<256x128xf32>
    %43 = tpu.matmul %40, %42, %cst_42 {dimension_numbers = #tpu.dot_dimension_numbers<[1], [0], [0], [1], [0, 0, 1, 1], [], []>} : vector<256x16xf32>, vector<16x128xf32>, vector<256x128xf32> -> vector<256x128xf32>
    %44 = arith.addf %37, %43 : vector<256x128xf32>
    %c0_43 = arith.constant 0 : index
    %c2_44 = arith.constant 2 : index
    %c0_45 = arith.constant 0 : index
    %c0_46 = arith.constant 0 : index
    %45 = vector.load %arg1[%c0_43, %c2_44, %c0_45, %c0_46] : memref<1x18x18x16xf32, #tpu.memory_space<vmem>>, vector<1x16x16x16xf32>
    %46 = vector.shape_cast %45 : vector<1x16x16x16xf32> to vector<16x16x16xf32>
    %47 = vector.shape_cast %46 : vector<16x16x16xf32> to vector<256x16xf32>
    %c6 = arith.constant 6 : index
    %c0_47 = arith.constant 0 : index
    %c0_48 = arith.constant 0 : index
    %48 = vector.load %arg2[%c6, %c0_47, %c0_48] : memref<9x16x128xf32, #tpu.memory_space<vmem>>, vector<1x16x128xf32>
    %49 = vector.shape_cast %48 : vector<1x16x128xf32> to vector<16x128xf32>
    %cst_49 = arith.constant dense<0.000000e+00> : vector<256x128xf32>
    %50 = tpu.matmul %47, %49, %cst_49 {dimension_numbers = #tpu.dot_dimension_numbers<[1], [0], [0], [1], [0, 0, 1, 1], [], []>} : vector<256x16xf32>, vector<16x128xf32>, vector<256x128xf32> -> vector<256x128xf32>
    %51 = arith.addf %44, %50 : vector<256x128xf32>
    %c0_50 = arith.constant 0 : index
    %c2_51 = arith.constant 2 : index
    %c1_52 = arith.constant 1 : index
    %c0_53 = arith.constant 0 : index
    %52 = vector.load %arg1[%c0_50, %c2_51, %c1_52, %c0_53] : memref<1x18x18x16xf32, #tpu.memory_space<vmem>>, vector<1x16x16x16xf32>
    %53 = vector.shape_cast %52 : vector<1x16x16x16xf32> to vector<16x16x16xf32>
    %54 = vector.shape_cast %53 : vector<16x16x16xf32> to vector<256x16xf32>
    %c7 = arith.constant 7 : index
    %c0_54 = arith.constant 0 : index
    %c0_55 = arith.constant 0 : index
    %55 = vector.load %arg2[%c7, %c0_54, %c0_55] : memref<9x16x128xf32, #tpu.memory_space<vmem>>, vector<1x16x128xf32>
    %56 = vector.shape_cast %55 : vector<1x16x128xf32> to vector<16x128xf32>
    %cst_56 = arith.constant dense<0.000000e+00> : vector<256x128xf32>
    %57 = tpu.matmul %54, %56, %cst_56 {dimension_numbers = #tpu.dot_dimension_numbers<[1], [0], [0], [1], [0, 0, 1, 1], [], []>} : vector<256x16xf32>, vector<16x128xf32>, vector<256x128xf32> -> vector<256x128xf32>
    %58 = arith.addf %51, %57 : vector<256x128xf32>
    %c0_57 = arith.constant 0 : index
    %c2_58 = arith.constant 2 : index
    %c2_59 = arith.constant 2 : index
    %c0_60 = arith.constant 0 : index
    %59 = vector.load %arg1[%c0_57, %c2_58, %c2_59, %c0_60] : memref<1x18x18x16xf32, #tpu.memory_space<vmem>>, vector<1x16x16x16xf32>
    %60 = vector.shape_cast %59 : vector<1x16x16x16xf32> to vector<16x16x16xf32>
    %61 = vector.shape_cast %60 : vector<16x16x16xf32> to vector<256x16xf32>
    %c8 = arith.constant 8 : index
    %c0_61 = arith.constant 0 : index
    %c0_62 = arith.constant 0 : index
    %62 = vector.load %arg2[%c8, %c0_61, %c0_62] : memref<9x16x128xf32, #tpu.memory_space<vmem>>, vector<1x16x128xf32>
    %63 = vector.shape_cast %62 : vector<1x16x128xf32> to vector<16x128xf32>
    %cst_63 = arith.constant dense<0.000000e+00> : vector<256x128xf32>
    %64 = tpu.matmul %61, %63, %cst_63 {dimension_numbers = #tpu.dot_dimension_numbers<[1], [0], [0], [1], [0, 0, 1, 1], [], []>} : vector<256x16xf32>, vector<16x128xf32>, vector<256x128xf32> -> vector<256x128xf32>
    %65 = arith.addf %58, %64 : vector<256x128xf32>
    %c0_64 = arith.constant 0 : index
    %c0_65 = arith.constant 0 : index
    %c0_66 = arith.constant 0 : index
    %66 = vector.load %arg4[%c0_64, %c0_65, %c0_66] : memref<1x256x128xf32, #tpu.memory_space<vmem>>, vector<1x256x128xf32>
    %67 = vector.shape_cast %66 : vector<1x256x128xf32> to vector<256x128xf32>
    %68 = vector.shape_cast %65 : vector<256x128xf32> to vector<1x256x128xf32>
    tpu.vector_store %arg4[%c0_64, %c0_65, %c0_66], %68 {strides = array<i32>} : memref<1x256x128xf32, #tpu.memory_space<vmem>>, vector<1x256x128xf32>,
    return
  }
  func.func @transform_0(%arg0: i32) -> (i32, i32, i32, i32) {
    %c0_i32 = arith.constant 0 : i32
    %c0_i32_0 = arith.constant 0 : i32
    %c0_i32_1 = arith.constant 0 : i32
    %c0_i32_2 = arith.constant 0 : i32
    return %arg0, %c0_i32, %c0_i32_0, %c0_i32_1 : i32, i32, i32, i32
  }
  func.func @transform_1(%arg0: i32) -> (i32, i32, i32) {
    %c0_i32 = arith.constant 0 : i32
    %c0_i32_0 = arith.constant 0 : i32
    %c0_i32_1 = arith.constant 0 : i32
    %c0_i32_2 = arith.constant 0 : i32
    return %c0_i32, %c0_i32_0, %c0_i32_1 : i32, i32, i32
  }
  func.func @transform_2(%arg0: i32) -> (i32, i32) {
    %c0_i32 = arith.constant 0 : i32
    %c0_i32_0 = arith.constant 0 : i32
    %c0_i32_1 = arith.constant 0 : i32
    return %c0_i32, %c0_i32_0 : i32, i32
  }
  func.func @transform_3(%arg0: i32) -> (i32, i32, i32) {
    %c0_i32 = arith.constant 0 : i32
    %c0_i32_0 = arith.constant 0 : i32
    %c0_i32_1 = arith.constant 0 : i32
    return %arg0, %c0_i32, %c0_i32_0 : i32, i32, i32
  }
}

</mosaic_0001>

<bundles_post_ra>
// kernel: up_pixel_shuffle.1
= control target key start
LH: loop header
LB: loop body
LE: loop exit
PB: predicated region body
PF: predicated region fallthrough
CT: control target
= control target key end

     0   :  { %8 = vsyncpa [#allocation3], 0  ;;  %s6587_s0 = inlined_call_operand.vmem [shape: f32[2,18,18,16], index: 0, kind: input, shape index: {}]   ;;  %s6588_s1 = inlined_call_operand.hbm [shape: f32[9,16,128], index: 1, kind: input, shape index: {}]   ;;  %s6589_s2 = inlined_call_operand.hbm [shape: f32[1,128], index: 2, kind: input, shape index: {}]   ;;  %s6590_s3 = inlined_call_operand.vmem [shape: f32[2,256,128], index: 3, kind: output, shape index: {}]  }
   0x1   :  { %9 = vsyncpa [#allocation5], 0  ;;  %s5533_s12 = smov 0  }
   0x2 LB: > { %s5539_s13 = sadd.s32 4294967295, %s5507_s12   ;;  %p3811_p0 = scmp.ge.s32.totalorder %s5507_s12, 1  ;;  %s5507_s12 = sphi %s5533_s12, %s15_s12  }
   0x3   : > { %p114_p1 = scmp.lt.s32.totalorder %s5507_s12, 3  ;;  %s5509_s14 = smov [#allocation2]  }
   0x4   : > { %s126_s15 = sshll.u32 %s5509_s14, 4  ;;  %p6591_p3 = scmp.eq.s32.totalorder %s5539_s13, 0  ;;  %s127_s15 = int_to_ptr.vmem [resolvable:$true] %s126_s15 }
   0x5   : > { %p5543_p2 = pnand %p3811_p0, %p114_p1  ;;  %s5510_s17 = smov [#allocation4]  }
   0x6   : > { %s140_s18 = sshll.u32 %s5510_s17, 4  ;;  %s5437_s22 = scalar_lea.hbm %s6588_s1, 2304  ;;  %s5556_s18 = int_to_ptr.vmem [resolvable:$true] %s140_s18 }
   0x7   : > { %s6645_s16 = scalar_select %p5543_p2, 1, 0 }
   0x8   : > { %p5414_p4 = pneg %p5543_p2  ;;  %p5438_p6 = scmp.ne.s32.totalorder %s6588_s1, %s5437_s22 }
   0x9   : > { %p5444_p10 = scmp.lt.u32.totalorder %s5437_s22, %s6588_s1 }
   0xa   : > { %p5552_p5 = pnand %p6591_p3, %p5414_p4 }
   0xc   : > { %p5439_p7 = pneg %p5552_p5 }
   0xe   : > { %p5440_p8 = pnand %p5439_p7, %p5438_p6 }
  0x10   : > { %p5441_p9 = pneg %p5440_p8 }
  0x12   : > { %p5446_p11 = pnand %p5444_p10, %p5441_p9 }
  0x14   : > { %5449 = shalt.err (!%p5446_p11)
}
  0x15   : > { %s5450_s27 = scalar_lea.vmem %s127_s15, 2304  ;;  %p5458_p1 = scmp.lt.s32.totalorder %s127_s15, %s127_s15 }
  0x16   : > { %p5451_p12 = scmp.ne.s32.totalorder %s127_s15, %s5450_s27  ;;  %p5459_p4 = scmp.lt.s32.totalorder %s5450_s27, %s5450_s27 }
  0x18   : > { %p5453_p13 = pnand %p5451_p12, %p5439_p7  ;;  %p5460_p3 = por %p5459_p4, %p5458_p1 }
  0x1a   : > { %p5454_p0 = pneg %p5453_p13 }
  0x1c   : > { %p5461_p2 = pnand %p5460_p3, %p5454_p0 }
  0x1e   : > { %5464 = shalt.err (!%p5461_p2)
}
  0x1f   : > { %s5511_s28 = smov 128   ;;  %s5512_s29 = smov 8  }
  0x20   : > { %5417 = dma.hbm_to_vmem [thread:$0]  (!%p5552_p5), %s6588_s1, 2304, %s127_s15, [#allocation3], %s5511_s28, %s5511_s28, %s5512_s29  }
  0x21   : > { %s5465_s7 = scalar_lea.hbm %s6589_s2, 16 }
  0x22   : > { %p5466_p6 = scmp.ne.s32.totalorder %s6589_s2, %s5465_s7  ;;  %p5472_p8 = scmp.lt.u32.totalorder %s5465_s7, %s6589_s2 }
  0x24   : > { %p5468_p2 = pnand %p5466_p6, %p5439_p7 }
  0x26   : > { %p5469_p3 = pneg %p5468_p2 }
  0x28   : > { %p5474_p9 = pnand %p5472_p8, %p5469_p3 }
  0x2a   : > { %5477 = shalt.err (!%p5474_p9)
}
  0x2b   : > { %s5478_s14 = scalar_lea.vmem %s5556_s18, 16  ;;  %s5485_s15 = scalar_lea.vmem %s5556_s18, 32 }
  0x2c   : > { %p5479_p10 = scmp.ne.s32.totalorder %s5556_s18, %s5478_s14  ;;  %p5486_p13 = scmp.lt.s32.totalorder %s5556_s18, %s5556_s18 }
  0x2d   : > { %p5487_p0 = scmp.lt.s32.totalorder %s5485_s15, %s5478_s14 }
  0x2e   : > { %p5481_p11 = pnand %p5479_p10, %p5439_p7 }
  0x2f   : > { %p5488_p1 = por %p5487_p0, %p5486_p13 }
  0x30   : > { %p5482_p12 = pneg %p5481_p11 }
  0x32   : > { %p5489_p4 = pnand %p5488_p1, %p5482_p12 }
  0x34   : > { %5492 = shalt.err (!%p5489_p4)
}
  0x35   : > { %5420 = dma.hbm_to_vmem [thread:$0]  (!%p5552_p5), %s6589_s2, 16, %s5556_s18, [#allocation5]  }
  0x36   : > { %p6647_p6 = scmp.ne.s32.totalorder %s6645_s16, 0 }
  0x38   : > { %161 = sbr.rel (%p6647_p6) target bundleno = 580 (0x244), region = 32 }
  0x3f   : > { %p6648_p7 = scmp.eq.s32.totalorder %s5539_s13, 0 }
  0x41   : > { %5498 = dma.done.wait (%p6648_p7), [#allocation3], 2304   ;;  %p6649_p2 = pmov %p6648_p7 }
  0x43   : > { %5500 = vsyncadd (%p6649_p2), [#allocation3], 4294964992  ;;  %p6650_p3 = pmov %p6649_p2 }
  0x44   : > { %p6651_p8 = pmov %p6649_p2 }
  0x45   : > { %5502 = dma.done.wait (%p6650_p3), [#allocation5], 16  }
  0x46   : > { %5504 = vsyncadd (%p6651_p8), [#allocation5], 4294967280  ;;  %p189_p9 = scmp.lt.s32.totalorder %s5539_s13, 1  ;;  %vm240_vm0 = vcmask 130048   ;;  %v238_v0 = vld [vmem:[#allocation2] sm:$0xff]  ;;  %v239_v1 = vld [vmem:[#allocation2 + $0x8] sm:$0xff] }
  0x47   : > { %v1792_v2 = vld [vmem:[#allocation2 + $0x40] sm:$0xff]  ;;  %v5079_v3 = vpack.c.bf16 %v239_v1, %v238_v0  ;;  %v1793_v4 = vld [vmem:[#allocation2 + $0x48] sm:$0xff]  ;;  %v627_v8 = vld [vmem:[#allocation2 + $0x10] sm:$0xff] }
  0x48   : > { %s6728_s13 = smov (!%p189_p9, %s5539_s13), 1  ;;  %v5630_v7 = vpack.c.bf16 %v1793_v4, %v1792_v2  ;;  %v628_v9 = vld [vmem:[#allocation2 + $0x18] sm:$0xff]  ;;  %v2180_v11 = vld [vmem:[#allocation2 + $0x50] sm:$0xff]  ;;  %v2569_v26 = vld [vmem:[#allocation2 + $0x60] sm:$0xff] }
  0x49   : > { %s5405_s16 = smul.u32 432, %s6728_s13  ;;  %5080 = vmatprep.subr.bf16.mxu1 %v5079_v3  ;;  %v5083_v10 = vpack.c.bf16 %v628_v9, %v627_v8  ;;  %v2181_v12 = vld [vmem:[#allocation2 + $0x58] sm:$0xff]  ;;  %v2570_v27 = vld [vmem:[#allocation2 + $0x68] sm:$0xff]  ;;  %v1015_v40 = vld [vmem:[#allocation2 + $0x20] sm:$0xff]  ;;  %s4304_s22 = sshll.u32 %s6728_s13, 8 }
  0x4a   : > { %5096 = vmatprep.subr.bf16.mxu0 %v5630_v7  ;;  %5082 = vmatpush3.bf16.msra.mxu1 %v5079_v3  ;;  %v5099_v14 = vpack.c.bf16 %v2181_v12, %v2180_v11  ;;  %v5103_v29 = vpack.c.bf16 %v2570_v27, %v2569_v26  ;;  %v1016_v42 = vld [vmem:[#allocation2 + $0x28] sm:$0xff]  ;;  %v2957_v52 = vld [vmem:[#allocation2 + $0x70] sm:$0xff]  ;;  %v2958_v53 = vld [vmem:[#allocation2 + $0x78] sm:$0xff]  ;;  %s6520_s25 = scalar_lea.vmem %s6590_s3, %s4304_s22 }
  0x4b   : > { %s5624_s21 = scalar_lea.vmem %s6587_s0, %s5405_s16  ;;  %5098 = vmatpush3.bf16.msra.mxu0 %v5630_v7  ;;  %5084 = vmatprep.subr.bf16.mxu1 %v5083_v10  ;;  %v5748_v43 = vpack.c.bf16 %v1016_v42, %v1015_v40  ;;  %v5809_v58 = vpack.c.bf16 %v2958_v53, %v2957_v52 }
  0x4c   : > { %v206_v5 = vld [vmem:[%s5624_s21] sm:$0xff]  ;;  %v207_v13 = vld [vmem:[%s5624_s21 + $0x8] sm:$0xff]  ;;  %5100 = vmatprep.subr.bf16.mxu0 %v5099_v14  ;;  %v5642_v16 = vld [vmem:[%s5624_s21 + $0x18] sm:$0xff] }
  0x4d   : > { %v5628_v6 = vld [vmem:[%s5624_s21 + $0x19] sm:$0xff]  ;;  %4615 = vmatprep.mubr.msk.f32.mxu1 %vm240_vm0, %v206_v5  ;;  %v5639_v15 = vld [vmem:[%s5624_s21 + $0x21] sm:$0xff]  ;;  %6652 = vst [vmem:[#allocation8_spill] sm:$0xff] %v5642_v16  ;;  %v5645_v17 = vld [vmem:[%s5624_s21 + $0x31] sm:$0xff] }
  0x4e   : > { %4823 = vmatprep.mubr.msk.f32.mxu0 %vm240_vm0, %v5628_v6  ;;  %4616 = vmatmul.mubr.msk.f32.vlgmr.msra.gmra.mrb[0].mxu1 %vm240_vm0, %v207_v13  ;;  %v5651_v18 = vld [vmem:[%s5624_s21 + $0x20] sm:$0xff]  ;;  %v5661_v20 = vld [vmem:[%s5624_s21 + $0x30] sm:$0xff]  ;;  %v5673_v22 = vld [vmem:[%s5624_s21 + $0x38] sm:$0xff] }
  0x4f   : > { %4824 = vmatmul.mubr.msk.f32.vlgmr.msra.gmra.mrb[0].mxu0 %vm240_vm0, %v5639_v15  ;;  %5086 = vmatpush3.bf16.msra.mxu1 %v5083_v10  ;;  %6653 = vst [vmem:[#allocation9_spill] sm:$0xff] %v5651_v18  ;;  %v5658_v19 = vld [vmem:[%s5624_s21 + $0x39] sm:$0xff]  ;;  %v5664_v21 = vld [vmem:[%s5624_s21 + $0x49] sm:$0xff]  ;;  %v5678_v23 = vld [vmem:[%s5624_s21 + $0x51] sm:$0xff] }
  0x50   : > { %4618 = vmatprep.mubr.msk.f32.mxu1 %vm240_vm0, %v5642_v16  ;;  %4826 = vmatprep.mubr.msk.f32.mxu0 %vm240_vm0, %v5645_v17  ;;  %v5681_v24 = vld [vmem:[%s5624_s21 + $0x48] sm:$0xff]  ;;  %v5693_v28 = vld [vmem:[%s5624_s21 + $0x50] sm:$0xff]  ;;  %v5701_v31 = vld [vmem:[%s5624_s21 + $0x60] sm:$0xff] }
  0x51   : > { %5102 = vmatpush3.bf16.msra.mxu0 %v5099_v14  ;;  %6654 = vst [vmem:[#allocation10_spill] sm:$0xff] %v5681_v24  ;;  %v5684_v25 = vld [vmem:[%s5624_s21 + $0x61] sm:$0xff]  ;;  %6655 = vst [vmem:[#allocation11_spill] sm:$0xff] %v5693_v28  ;;  %v5698_v30 = vld [vmem:[%s5624_s21 + $0x69] sm:$0xff]  ;;  %5088 = vmatprep.subr.bf16.mxu1 %v5748_v43 }
  0x52   : > { %4619 = vmatmul.mubr.msk.f32.gmra.mrb[2].mxu1 %vm240_vm0, %v5651_v18  ;;  %6656 = vst [vmem:[#allocation12_spill] sm:$0xff] %v5701_v31  ;;  %v5704_v32 = vld [vmem:[%s5624_s21 + $0x79] sm:$0xff]  ;;  %5104 = vmatprep.subr.bf16.mxu0 %v5103_v29  ;;  %v5713_v33 = vld [vmem:[%s5624_s21 + $0x68] sm:$0xff]  ;;  %v5724_v36 = vld [vmem:[%s5624_s21 + $0x91] sm:$0xff] }
  0x53   : > { %4827 = vmatmul.mubr.msk.f32.gmra.mrb[2].mxu0 %vm240_vm0, %v5658_v19  ;;  %4621 = vmatprep.mubr.msk.f32.mxu1 %vm240_vm0, %v5661_v20  ;;  %6657 = vst [vmem:[#allocation13_spill] sm:$0xff] %v5713_v33  ;;  %v5718_v34 = vld [vmem:[%s5624_s21 + $0x81] sm:$0xff]  ;;  %v5721_v35 = vld [vmem:[%s5624_s21 + $0x78] sm:$0xff]  ;;  %6659 = vst [vmem:[#allocation15_spill] sm:$0xff] %v5724_v36 }
  0x54   : > { %4829 = vmatprep.mubr.msk.f32.mxu0 %vm240_vm0, %v5664_v21  ;;  %6658 = vst [vmem:[#allocation14_spill] sm:$0xff] %v5721_v35  ;;  %v5733_v37 = vld [vmem:[%s5624_s21 + $0x80] sm:$0xff]  ;;  %v5741_v39 = vld [vmem:[%s5624_s21 + $0x90] sm:$0xff]  ;;  %v5755_v44 = vld [vmem:[%s5624_s21 + $0x98] sm:$0xff] }
  0x55   : > { %6660 = vst [vmem:[#allocation16_spill] sm:$0xff] %v5733_v37  ;;  %v5738_v38 = vld [vmem:[%s5624_s21 + $0x99] sm:$0xff]  ;;  %6661 = vst [vmem:[#allocation17_spill] sm:$0xff] %v5741_v39  ;;  %v5744_v41 = vld [vmem:[%s5624_s21 + $0xa9] sm:$0xff] }
  0x56   : > { %4622 = vmatmul.mubr.msk.f32.gmra.mrb[4].mxu1 %vm240_vm0, %v5673_v22  ;;  %6662 = vst [vmem:[#allocation18_spill] sm:$0xff] %v5755_v44  ;;  %v5760_v45 = vld [vmem:[%s5624_s21 + $0xb1] sm:$0xff]  ;;  %v5763_v46 = vld [vmem:[%s5624_s21 + $0xa8] sm:$0xff]  ;;  %v5784_v50 = vld [vmem:[%s5624_s21 + $0xc0] sm:$0xff] }
  0x57   : > { %4830 = vmatmul.mubr.msk.f32.gmra.mrb[4].mxu0 %vm240_vm0, %v5678_v23  ;;  %4624 = vmatprep.mubr.msk.f32.mxu1 %vm240_vm0, %v5681_v24  ;;  %6663 = vst [vmem:[#allocation19_spill] sm:$0xff] %v5763_v46  ;;  %v5767_v47 = vld [vmem:[%s5624_s21 + $0xc1] sm:$0xff]  ;;  %v5776_v48 = vld [vmem:[%s5624_s21 + $0xb0] sm:$0xff]  ;;  %6665 = vst [vmem:[#allocation21_spill] sm:$0xff] %v5784_v50 }
  0x58   : > { %4832 = vmatprep.mubr.msk.f32.mxu0 %vm240_vm0, %v5684_v25  ;;  %6664 = vst [vmem:[#allocation20_spill] sm:$0xff] %v5776_v48  ;;  %v5781_v49 = vld [vmem:[%s5624_s21 + $0xc9] sm:$0xff]  ;;  %v5787_v51 = vld [vmem:[%s5624_s21 + $0x1a] sm:$0xff]  ;;  %v5807_v57 = vld [vmem:[%s5624_s21 + $0x32] sm:$0xff] }
  0x59   : > { %v5796_v54 = vld [vmem:[%s5624_s21 + $0xc8] sm:$0xff]  ;;  %v5804_v56 = vld [vmem:[%s5624_s21 + $0xd8] sm:$0xff]  ;;  %v5818_v59 = vld [vmem:[%s5624_s21 + $0xe0] sm:$0xff] }
  0x5a   : > { %4625 = vmatmul.mubr.msk.f32.gmra.mrb[6].mxu1 %vm240_vm0, %v5693_v28  ;;  %v5801_v55 = vld [vmem:[%s5624_s21 + $0x22] sm:$0xff]  ;;  %v5823_v60 = vld [vmem:[%s5624_s21 + $0x3a] sm:$0xff]  ;;  %v5826_v61 = vld [vmem:[%s5624_s21 + $0xf0] sm:$0xff] }
  0x5b   : > { %4833 = vmatmul.mubr.msk.f32.gmra.mrb[6].mxu0 %vm240_vm0, %v5698_v30  ;;  %4627 = vmatprep.mubr.msk.f32.mxu1 %vm240_vm0, %v5701_v31  ;;  %v5829_v62 = vld [vmem:[%s5624_s21 + $0x4a] sm:$0xff]  ;;  %v5839_v63 = vld [vmem:[%s5624_s21 + $0xf8] sm:$0xff]  ;;  %v5850_v2 = vld [vmem:[%s5624_s21 + $0x62] sm:$0xff] }
  0x5c   : > { %4835 = vmatprep.mubr.msk.f32.mxu0 %vm240_vm0, %v5704_v32  ;;  %v5844_v0 = vld [vmem:[%s5624_s21 + $0x52] sm:$0xff]  ;;  %v5847_v1 = vld [vmem:[%s5624_s21 + $0x108] sm:$0xff]  ;;  %v5867_v5 = vld [vmem:[%s5624_s21 + $0x120] sm:$0xff] }
  0x5d   : > { %v5859_v3 = vld [vmem:[%s5624_s21 + $0x110] sm:$0xff]  ;;  %v5870_v8 = vld [vmem:[%s5624_s21 + $0x7a] sm:$0xff]  ;;  %v5879_v9 = vld [vmem:[%s5624_s21 + $0x128] sm:$0xff] }
  0x5e   : > { %4628 = vmatmul.mubr.msk.f32.gmra.mrb[8].mxu1 %vm240_vm0, %v5713_v33  ;;  %v5864_v4 = vld [vmem:[%s5624_s21 + $0x6a] sm:$0xff]  ;;  %v5884_v10 = vld [vmem:[%s5624_s21 + $0x82] sm:$0xff]  ;;  %v5887_v11 = vld [vmem:[%s5624_s21 + $0x138] sm:$0xff] }
  0x5f   : > { %4836 = vmatmul.mubr.msk.f32.gmra.mrb[8].mxu0 %vm240_vm0, %v5718_v34  ;;  %4630 = vmatprep.mubr.msk.f32.mxu1 %vm240_vm0, %v5721_v35  ;;  %6666 = vst [vmem:[#allocation22_spill] sm:$0xff] %v5884_v10  ;;  %v5890_v12 = vld [vmem:[%s5624_s21 + $0x92] sm:$0xff]  ;;  %v5899_v13 = vld [vmem:[%s5624_s21 + $0x140] sm:$0xff]  ;;  %v5910_v27 = vld [vmem:[%s5624_s21 + $0xaa] sm:$0xff] }
  0x60   : > { %4838 = vmatprep.mubr.msk.f32.mxu0 %vm240_vm0, %v5724_v36  ;;  %6667 = vst [vmem:[#allocation23_spill] sm:$0xff] %v5890_v12  ;;  %6668 = vst [vmem:[#allocation24_spill] sm:$0xff] %v5899_v13  ;;  %v5904_v14 = vld [vmem:[%s5624_s21 + $0x9a] sm:$0xff]  ;;  %v5907_v26 = vld [vmem:[%s5624_s21 + $0x150] sm:$0xff] }
  0x61   : > { %6669 = vst [vmem:[#allocation25_spill] sm:$0xff] %v5904_v14  ;;  %6670 = vst [vmem:[#allocation26_spill] sm:$0xff] %v5907_v26  ;;  %v5924_v40 = vld [vmem:[%s5624_s21 + $0xb2] sm:$0xff]  ;;  %v5927_v42 = vld [vmem:[%s5624_s21 + $0x168] sm:$0xff] }
  0x62   : > { %4631 = vmatmul.mubr.msk.f32.gmra.mrb[10].mxu1 %vm240_vm0, %v5733_v37  ;;  %6671 = vst [vmem:[#allocation27_spill] sm:$0xff] %v5910_v27  ;;  %6673 = vst [vmem:[#allocation29_spill] sm:$0xff] %v5924_v40  ;;  %v5930_v52 = vld [vmem:[%s5624_s21 + $0xc2] sm:$0xff]  ;;  %v5939_v53 = vld [vmem:[%s5624_s21 + $0x170] sm:$0xff] }
  0x63   : > { %4839 = vmatmul.mubr.msk.f32.gmra.mrb[10].mxu0 %vm240_vm0, %v5738_v38  ;;  %4633 = vmatprep.mubr.msk.f32.mxu1 %vm240_vm0, %v5741_v39  ;;  %6674 = vst [vmem:[#allocation30_spill] sm:$0xff] %v5927_v42  ;;  %6675 = vst [vmem:[#allocation31_spill] sm:$0xff] %v5930_v52  ;;  %v5944_v18 = vld [vmem:[%s5624_s21 + $0xca] sm:$0xff]  ;;  %v594_v16 = vld [vmem:[%s5624_s21 + $0x1] sm:$0xff] }
  0x64   : > { %4841 = vmatprep.mubr.msk.f32.mxu0 %vm240_vm0, %v5744_v41  ;;  %6676 = vst [vmem:[#allocation32_spill] sm:$0xff] %v5939_v53 }
  0x66   : > { %4634 = vmatmul.mubr.msk.f32.gmra.mrb[12].mxu1 %vm240_vm0, %v5755_v44 }
  0x67   : > { %4842 = vmatmul.mubr.msk.f32.gmra.mrb[12].mxu0 %vm240_vm0, %v5760_v45  ;;  %4636 = vmatprep.mubr.msk.f32.mxu1 %vm240_vm0, %v5763_v46 }
  0x68   : > { %4844 = vmatprep.mubr.msk.f32.mxu0 %vm240_vm0, %v5767_v47 }
  0x6a   : > { %4637 = vmatmul.mubr.msk.f32.gmra.mrb[14].mxu1 %vm240_vm0, %v5776_v48 }
  0x6b   : > { %4845 = vmatmul.mubr.msk.f32.gmra.mrb[14].mxu0 %vm240_vm0, %v5781_v49  ;;  %4639 = vmatprep.mubr.msk.f32.mxu1 %vm240_vm0, %v5784_v50 }
  0x6c   : > { %4875 = vmatprep.mubr.msk.f32.mxu0 %vm240_vm0, %v5787_v51 }
  0x6e   : > { %4640 = vmatmul.mubr.msk.f32.gmra.mrb[16].mxu1 %vm240_vm0, %v5796_v54 }
  0x6f   : > { %4876 = vmatmul.mubr.msk.f32.vlgmr.msra.gmra.mrb[0].mxu0 %vm240_vm0, %v5801_v55  ;;  %4642 = vmatprep.mubr.msk.f32.mxu1 %vm240_vm0, %v5804_v56 }
  0x70   : > { %4878 = vmatprep.mubr.msk.f32.mxu0 %vm240_vm0, %v5807_v57  ;;  %5106 = vmatpush3.bf16.msra.mxu0 %v5103_v29  ;;  %v5919_v29 = vld [vmem:[%s5624_s21 + $0x158] sm:$0xff] }
  0x71   : > { %5108 = vmatprep.subr.bf16.mxu0 %v5809_v58  ;;  %6672 = vst [vmem:[#allocation28_spill] sm:$0xff] %v5919_v29 }
  0x72   : > { %4643 = vmatmul.mubr.msk.f32.gmra.mrb[18].mxu1 %vm240_vm0, %v5818_v59 }
  0x73   : > { %4879 = vmatmul.mubr.msk.f32.gmra.mrb[2].mxu0 %vm240_vm0, %v5823_v60  ;;  %4645 = vmatprep.mubr.msk.f32.mxu1 %vm240_vm0, %v5826_v61 }
  0x74   : > { %4881 = vmatprep.mubr.msk.f32.mxu0 %vm240_vm0, %v5829_v62 }
  0x76   : > { %4646 = vmatmul.mubr.msk.f32.gmra.mrb[20].mxu1 %vm240_vm0, %v5839_v63 }
  0x77   : > { %4882 = vmatmul.mubr.msk.f32.gmra.mrb[4].mxu0 %vm240_vm0, %v5844_v0  ;;  %4648 = vmatprep.mubr.msk.f32.mxu1 %vm240_vm0, %v5847_v1 }
  0x78   : > { %4884 = vmatprep.mubr.msk.f32.mxu0 %vm240_vm0, %v5850_v2 }
  0x7a   : > { %4649 = vmatmul.mubr.msk.f32.gmra.mrb[22].mxu1 %vm240_vm0, %v5859_v3 }
  0x7b   : > { %4885 = vmatmul.mubr.msk.f32.gmra.mrb[6].mxu0 %vm240_vm0, %v5864_v4  ;;  %4651 = vmatprep.mubr.msk.f32.mxu1 %vm240_vm0, %v5867_v5 }
  0x7c   : > { %4887 = vmatprep.mubr.msk.f32.mxu0 %vm240_vm0, %v5870_v8 }
  0x7e   : > { %4652 = vmatmul.mubr.msk.f32.gmra.mrb[24].mxu1 %vm240_vm0, %v5879_v9 }
  0x7f   : > { %4888 = vmatmul.mubr.msk.f32.gmra.mrb[8].mxu0 %vm240_vm0, %v5884_v10  ;;  %4654 = vmatprep.mubr.msk.f32.mxu1 %vm240_vm0, %v5887_v11  ;;  %v5962_v10 = vld [vmem:[%s5624_s21 + $0xf2] sm:$0xff] }
  0x80   : > { %4890 = vmatprep.mubr.msk.f32.mxu0 %vm240_vm0, %v5890_v12  ;;  %v595_v12 = vld [vmem:[%s5624_s21 + $0x9] sm:$0xff] }
  0x82   : > { %4655 = vmatmul.mubr.msk.f32.gmra.mrb[26].mxu1 %vm240_vm0, %v5899_v13 }
  0x83   : > { %4891 = vmatmul.mubr.msk.f32.gmra.mrb[10].mxu0 %vm240_vm0, %v5904_v14  ;;  %4657 = vmatprep.mubr.msk.f32.mxu1 %vm240_vm0, %v5907_v26  ;;  %v1404_v14 = vld [vmem:[#allocation2 + $0x30] sm:$0xff] }
  0x84   : > { %4893 = vmatprep.mubr.msk.f32.mxu0 %vm240_vm0, %v5910_v27  ;;  %v5948_v27 = vld [vmem:[%s5624_s21 + $0xda] sm:$0xff] }
  0x85   : > { %6677 = vst [vmem:[#allocation33_spill] sm:$0xff] %v5948_v27 }
  0x86   : > { %4658 = vmatmul.mubr.msk.f32.gmra.mrb[28].mxu1 %vm240_vm0, %v5919_v29 }
  0x87   : > { %4894 = vmatmul.mubr.msk.f32.gmra.mrb[12].mxu0 %vm240_vm0, %v5924_v40  ;;  %4660 = vmatprep.mubr.msk.f32.mxu1 %vm240_vm0, %v5927_v42  ;;  %v1405_v40 = vld [vmem:[#allocation2 + $0x38] sm:$0xff] }
  0x88   : > { %4896 = vmatprep.mubr.msk.f32.mxu0 %vm240_vm0, %v5930_v52  ;;  %v5959_v52 = vld [vmem:[%s5624_s21 + $0xe2] sm:$0xff]  ;;  %v5964_v42 = vpack.c.bf16 %v1405_v40, %v1404_v14  ;;  %v6021_v40 = vld [vmem:[%s5624_s21 + $0x152] sm:$0xff] }
  0x89   : > { %v6018_v14 = vld [vmem:[%s5624_s21 + $0x142] sm:$0xff]  ;;  %6681 = vst [vmem:[#allocation37_spill] sm:$0xff] %v6021_v40 }
  0x8a   : > { %4661 = vmatmul.mubr.msk.f32.gmra.mrb[30].mxu1 %vm240_vm0, %v5939_v53  ;;  %6680 = vst [vmem:[#allocation36_spill] sm:$0xff] %v6018_v14 }
  0x8b   : > { %4897 = vmatmul.mubr.msk.f32.gmra.mrb[14].mxu0 %vm240_vm0, %v5944_v18  ;;  %4667 = vmatprep.mubr.msk.f32.mxu1 %vm240_vm0, %v594_v16  ;;  %v5975_v16 = vld [vmem:[%s5624_s21 + $0xfa] sm:$0xff] }
  0x8c   : > { %4899 = vmatprep.mubr.msk.f32.mxu0 %vm240_vm0, %v5948_v27  ;;  %v5978_v27 = vld [vmem:[%s5624_s21 + $0x10a] sm:$0xff] }
  0x8e   : > { %4668 = vmatmul.mubr.msk.f32.vlgmr.msra.gmra.mrb[0].mxu1 %vm240_vm0, %v595_v12  ;;  %v6007_v12 = vld [vmem:[%s5624_s21 + $0x13a] sm:$0xff] }
  0x8f   : > { %4900 = vmatmul.mubr.msk.f32.gmra.mrb[16].mxu0 %vm240_vm0, %v5959_v52  ;;  %5090 = vmatpush3.bf16.msra.mxu1 %v5748_v43  ;;  %v5993_v43 = vld [vmem:[%s5624_s21 + $0x122] sm:$0xff]  ;;  %6679 = vst [vmem:[#allocation35_spill] sm:$0xff] %v6007_v12 }
  0x90   : > { %4670 = vmatprep.mubr.msk.f32.mxu1 %vm240_vm0, %v5628_v6  ;;  %4902 = vmatprep.mubr.msk.f32.mxu0 %vm240_vm0, %v5962_v10  ;;  %v5990_v6 = vld [vmem:[%s5624_s21 + $0x112] sm:$0xff] }
  0x91   : > { %5092 = vmatprep.subr.bf16.mxu1 %v5964_v42 }
  0x92   : > { %4671 = vmatmul.mubr.msk.f32.gmra.mrb[2].mxu1 %vm240_vm0, %v5639_v15  ;;  %v6004_v15 = vld [vmem:[%s5624_s21 + $0x12a] sm:$0xff] }
  0x93   : > { %4903 = vmatmul.mubr.msk.f32.gmra.mrb[18].mxu0 %vm240_vm0, %v5975_v16  ;;  %4673 = vmatprep.mubr.msk.f32.mxu1 %vm240_vm0, %v5645_v17  ;;  %6678 = vst [vmem:[#allocation34_spill] sm:$0xff] %v6004_v15 }
  0x94   : > { %4905 = vmatprep.mubr.msk.f32.mxu0 %vm240_vm0, %v5978_v27 }
  0x96   : > { %4674 = vmatmul.mubr.msk.f32.gmra.mrb[4].mxu1 %vm240_vm0, %v5658_v19 }
  0x97   : > { %4906 = vmatmul.mubr.msk.f32.gmra.mrb[20].mxu0 %vm240_vm0, %v5990_v6  ;;  %4676 = vmatprep.mubr.msk.f32.mxu1 %vm240_vm0, %v5664_v21 }
  0x98   : > { %4908 = vmatprep.mubr.msk.f32.mxu0 %vm240_vm0, %v5993_v43 }
  0x9a   : > { %4677 = vmatmul.mubr.msk.f32.gmra.mrb[6].mxu1 %vm240_vm0, %v5678_v23 }
  0x9b   : > { %4909 = vmatmul.mubr.msk.f32.gmra.mrb[22].mxu0 %vm240_vm0, %v6004_v15  ;;  %4679 = vmatprep.mubr.msk.f32.mxu1 %vm240_vm0, %v5684_v25  ;;  %v6032_v15 = vld [vmem:[%s5624_s21 + $0x15a] sm:$0xff] }
  0x9c   : > { %4911 = vmatprep.mubr.msk.f32.mxu0 %vm240_vm0, %v6007_v12  ;;  %6682 = vst [vmem:[#allocation38_spill] sm:$0xff] %v6032_v15  ;;  %v6035_v12 = vld [vmem:[%s5624_s21 + $0x16a] sm:$0xff] }
  0x9d   : > { %6683 = vst [vmem:[#allocation39_spill] sm:$0xff] %v6035_v12 }
  0x9e   : > { %4680 = vmatmul.mubr.msk.f32.gmra.mrb[8].mxu1 %vm240_vm0, %v5698_v30 }
  0x9f   : > { %4912 = vmatmul.mubr.msk.f32.gmra.mrb[24].mxu0 %vm240_vm0, %v6018_v14  ;;  %4682 = vmatprep.mubr.msk.f32.mxu1 %vm240_vm0, %v5704_v32  ;;  %v6046_v14 = vld [vmem:[%s5624_s21 + $0x172] sm:$0xff] }
  0xa0   : > { %4914 = vmatprep.mubr.msk.f32.mxu0 %vm240_vm0, %v6021_v40  ;;  %6684 = vst [vmem:[#allocation40_spill] sm:$0xff] %v6046_v14  ;;  %v6049_v40 = vld [vmem:[%s5624_s21 + $0x182] sm:$0xff] }
  0xa1   : > { %6685 = vst [vmem:[#allocation41_spill] sm:$0xff] %v6049_v40 }
  0xa2   : > { %4683 = vmatmul.mubr.msk.f32.gmra.mrb[10].mxu1 %vm240_vm0, %v5718_v34 }
  0xa3   : > { %4915 = vmatmul.mubr.msk.f32.gmra.mrb[26].mxu0 %vm240_vm0, %v6032_v15  ;;  %4685 = vmatprep.mubr.msk.f32.mxu1 %vm240_vm0, %v5724_v36  ;;  %v6060_v15 = vld [vmem:[%s5624_s21 + $0x18a] sm:$0xff] }
  0xa4   : > { %4917 = vmatprep.mubr.msk.f32.mxu0 %vm240_vm0, %v6035_v12  ;;  %6686 = vst [vmem:[#allocation42_spill] sm:$0xff] %v6060_v15  ;;  %v3345_v12 = vld [vmem:[#allocation2 + $0x80] sm:$0xff]  ;;  %v3346_v36 = vld [vmem:[#allocation2 + $0x88] sm:$0xff] }
  0xa6   : > { %4686 = vmatmul.mubr.msk.f32.gmra.mrb[12].mxu1 %vm240_vm0, %v5738_v38 }
  0xa7   : > { %4918 = vmatmul.mubr.msk.f32.gmra.mrb[28].mxu0 %vm240_vm0, %v6046_v14  ;;  %4688 = vmatprep.mubr.msk.f32.mxu1 %vm240_vm0, %v5744_v41  ;;  %v6073_v14 = vpack.c.bf16 %v3346_v36, %v3345_v12  ;;  %v6088_v36 = vld [vmem:[%s5624_s21 + $0xf1] sm:$0xff]  ;;  %v6098_v12 = vld [vmem:[%s5624_s21 + $0xf9] sm:$0xff] }
  0xa8   : > { %4920 = vmatprep.mubr.msk.f32.mxu0 %vm240_vm0, %v6049_v40  ;;  %v6071_v40 = vld [vmem:[%s5624_s21 + $0xd9] sm:$0xff] }
  0xaa   : > { %4689 = vmatmul.mubr.msk.f32.gmra.mrb[14].mxu1 %vm240_vm0, %v5760_v45 }
  0xab   : > { %4921 = vmatmul.mubr.msk.f32.gmra.mrb[30].mxu0 %vm240_vm0, %v6060_v15  ;;  %4691 = vmatprep.mubr.msk.f32.mxu1 %vm240_vm0, %v5767_v47  ;;  %v6082_v15 = vld [vmem:[%s5624_s21 + $0xe1] sm:$0xff] }
  0xac   : > { %4927 = vmatprep.mubr.msk.f32.mxu0 %vm240_vm0, %v5661_v20 }
  0xae   : > { %4692 = vmatmul.mubr.msk.f32.gmra.mrb[16].mxu1 %vm240_vm0, %v5781_v49 }
  0xaf   : > { %4928 = vmatmul.mubr.msk.f32.vlgmr.msra.gmra.mrb[0].mxu0 %vm240_vm0, %v5673_v22  ;;  %4694 = vmatprep.mubr.msk.f32.mxu1 %vm240_vm0, %v6071_v40 }
  0xb0   : > { %4930 = vmatprep.mubr.msk.f32.mxu0 %vm240_vm0, %v5681_v24  ;;  %5110 = vmatpush3.bf16.msra.mxu0 %v5809_v58  ;;  %v6103_v58 = vld [vmem:[%s5624_s21 + $0x109] sm:$0xff]  ;;  %v6117_v24 = vld [vmem:[%s5624_s21 + $0x121] sm:$0xff] }
  0xb1   : > { %5112 = vmatprep.subr.bf16.mxu0 %v6073_v14 }
  0xb2   : > { %4695 = vmatmul.mubr.msk.f32.gmra.mrb[18].mxu1 %vm240_vm0, %v6082_v15 }
  0xb3   : > { %4931 = vmatmul.mubr.msk.f32.gmra.mrb[2].mxu0 %vm240_vm0, %v5693_v28  ;;  %4697 = vmatprep.mubr.msk.f32.mxu1 %vm240_vm0, %v6088_v36  ;;  %v6112_v28 = vld [vmem:[%s5624_s21 + $0x111] sm:$0xff] }
  0xb4   : > { %4933 = vmatprep.mubr.msk.f32.mxu0 %vm240_vm0, %v5701_v31  ;;  %v6131_v31 = vld [vmem:[%s5624_s21 + $0x139] sm:$0xff] }
  0xb6   : > { %4698 = vmatmul.mubr.msk.f32.gmra.mrb[20].mxu1 %vm240_vm0, %v6098_v12 }
  0xb7   : > { %4934 = vmatmul.mubr.msk.f32.gmra.mrb[4].mxu0 %vm240_vm0, %v5713_v33  ;;  %4700 = vmatprep.mubr.msk.f32.mxu1 %vm240_vm0, %v6103_v58  ;;  %v6126_v33 = vld [vmem:[%s5624_s21 + $0x129] sm:$0xff] }
  0xb8   : > { %4936 = vmatprep.mubr.msk.f32.mxu0 %vm240_vm0, %v5721_v35  ;;  %v6145_v35 = vld [vmem:[%s5624_s21 + $0x151] sm:$0xff] }
  0xba   : > { %4701 = vmatmul.mubr.msk.f32.gmra.mrb[22].mxu1 %vm240_vm0, %v6112_v28 }
  0xbb   : > { %4937 = vmatmul.mubr.msk.f32.gmra.mrb[6].mxu0 %vm240_vm0, %v5733_v37  ;;  %4703 = vmatprep.mubr.msk.f32.mxu1 %vm240_vm0, %v6117_v24  ;;  %v6140_v37 = vld [vmem:[%s5624_s21 + $0x141] sm:$0xff] }
  0xbc   : > { %4939 = vmatprep.mubr.msk.f32.mxu0 %vm240_vm0, %v5741_v39  ;;  %v6159_v39 = vld [vmem:[%s5624_s21 + $0x169] sm:$0xff] }
  0xbe   : > { %4704 = vmatmul.mubr.msk.f32.gmra.mrb[24].mxu1 %vm240_vm0, %v6126_v33 }
  0xbf   : > { %4940 = vmatmul.mubr.msk.f32.gmra.mrb[8].mxu0 %vm240_vm0, %v5755_v44  ;;  %4706 = vmatprep.mubr.msk.f32.mxu1 %vm240_vm0, %v6131_v31  ;;  %v6154_v44 = vld [vmem:[%s5624_s21 + $0x159] sm:$0xff] }
  0xc0   : > { %4942 = vmatprep.mubr.msk.f32.mxu0 %vm240_vm0, %v5763_v46  ;;  %v982_v46 = vld [vmem:[%s5624_s21 + $0x2] sm:$0xff] }
  0xc2   : > { %4707 = vmatmul.mubr.msk.f32.gmra.mrb[26].mxu1 %vm240_vm0, %v6140_v37 }
  0xc3   : > { %4943 = vmatmul.mubr.msk.f32.gmra.mrb[10].mxu0 %vm240_vm0, %v5776_v48  ;;  %4709 = vmatprep.mubr.msk.f32.mxu1 %vm240_vm0, %v6145_v35  ;;  %v6168_v48 = vld [vmem:[%s5624_s21 + $0x171] sm:$0xff] }
  0xc4   : > { %4945 = vmatprep.mubr.msk.f32.mxu0 %vm240_vm0, %v5784_v50  ;;  %v983_v50 = vld [vmem:[%s5624_s21 + $0xa] sm:$0xff] }
  0xc6   : > { %4710 = vmatmul.mubr.msk.f32.gmra.mrb[28].mxu1 %vm240_vm0, %v6154_v44 }
  0xc7   : > { %4946 = vmatmul.mubr.msk.f32.gmra.mrb[12].mxu0 %vm240_vm0, %v5796_v54  ;;  %4712 = vmatprep.mubr.msk.f32.mxu1 %vm240_vm0, %v6159_v39 }
  0xc8   : > { %4948 = vmatprep.mubr.msk.f32.mxu0 %vm240_vm0, %v5804_v56 }
  0xca   : > { %4713 = vmatmul.mubr.msk.f32.gmra.mrb[30].mxu1 %vm240_vm0, %v6168_v48 }
  0xcb   : > { %4949 = vmatmul.mubr.msk.f32.gmra.mrb[14].mxu0 %vm240_vm0, %v5818_v59  ;;  %4719 = vmatprep.mubr.msk.f32.mxu1 %vm240_vm0, %v982_v46  ;;  %v6687_v46 = vld [vmem:[#allocation30_spill] sm:$0xff] }
  0xcc   : > { %4951 = vmatprep.mubr.msk.f32.mxu0 %vm240_vm0, %v5826_v61 }
  0xce   : > { %4720 = vmatmul.mubr.msk.f32.vlgmr.msra.gmra.mrb[0].mxu1 %vm240_vm0, %v983_v50  ;;  %v6223_v50 = vld [vmem:[%s5624_s21 + $0x180] sm:$0xff] }
  0xcf   : > { %4952 = vmatmul.mubr.msk.f32.gmra.mrb[16].mxu0 %vm240_vm0, %v5839_v63  ;;  %5094 = vmatpush3.bf16.msra.mxu1 %v5964_v42  ;;  %6688 = vst [vmem:[#allocation43_spill] sm:$0xff] %v6223_v50  ;;  %v6234_v42 = vld [vmem:[%s5624_s21 + $0x188] sm:$0xff] }
  0xd0   : > { %4722 = vmatprep.mubr.msk.f32.mxu1 %vm240_vm0, %v5787_v51  ;;  %4954 = vmatprep.mubr.msk.f32.mxu0 %vm240_vm0, %v5847_v1  ;;  %v6689_v51 = vld [vmem:[#allocation22_spill] sm:$0xff] }
  0xd1   : > { %5115 = vmatprep.subr.bf16.mxu1 %v5630_v7  ;;  %6691 = vst [vmem:[#allocation22_spill] sm:$0xff] %v6234_v42 }
  0xd2   : > { %4723 = vmatmul.mubr.msk.f32.gmra.mrb[2].mxu1 %vm240_vm0, %v5801_v55  ;;  %v6690_v55 = vld [vmem:[#allocation23_spill] sm:$0xff] }
  0xd3   : > { %4955 = vmatmul.mubr.msk.f32.gmra.mrb[18].mxu0 %vm240_vm0, %v5859_v3  ;;  %4725 = vmatprep.mubr.msk.f32.mxu1 %vm240_vm0, %v5807_v57 }
  0xd4   : > { %4957 = vmatprep.mubr.msk.f32.mxu0 %vm240_vm0, %v5867_v5 }
  0xd6   : > { %4726 = vmatmul.mubr.msk.f32.gmra.mrb[4].mxu1 %vm240_vm0, %v5823_v60 }
  0xd7   : > { %4958 = vmatmul.mubr.msk.f32.gmra.mrb[20].mxu0 %vm240_vm0, %v5879_v9  ;;  %4728 = vmatprep.mubr.msk.f32.mxu1 %vm240_vm0, %v5829_v62 }
  0xd8   : > { %4960 = vmatprep.mubr.msk.f32.mxu0 %vm240_vm0, %v5887_v11 }
  0xda   : > { %4729 = vmatmul.mubr.msk.f32.gmra.mrb[6].mxu1 %vm240_vm0, %v5844_v0 }
  0xdb   : > { %4961 = vmatmul.mubr.msk.f32.gmra.mrb[22].mxu0 %vm240_vm0, %v5899_v13  ;;  %4731 = vmatprep.mubr.msk.f32.mxu1 %vm240_vm0, %v5850_v2  ;;  %v6694_v13 = vld [vmem:[#allocation29_spill] sm:$0xff] }
  0xdc   : > { %4963 = vmatprep.mubr.msk.f32.mxu0 %vm240_vm0, %v5907_v26  ;;  %v6692_v26 = vld [vmem:[#allocation25_spill] sm:$0xff] }
  0xde   : > { %4732 = vmatmul.mubr.msk.f32.gmra.mrb[8].mxu1 %vm240_vm0, %v5864_v4 }
  0xdf   : > { %4964 = vmatmul.mubr.msk.f32.gmra.mrb[24].mxu0 %vm240_vm0, %v5919_v29  ;;  %4734 = vmatprep.mubr.msk.f32.mxu1 %vm240_vm0, %v5870_v8  ;;  %v4140_v29 = vld [vmem:[%s5624_s21 + $0x198] sm:$0xff] }
  0xe0   : > { %4966 = vmatprep.mubr.msk.f32.mxu0 %vm240_vm0, %v6687_v46  ;;  %v6693_v46 = vld [vmem:[#allocation27_spill] sm:$0xff] }
  0xe2   : > { %4735 = vmatmul.mubr.msk.f32.gmra.mrb[10].mxu1 %vm240_vm0, %v6689_v51 }
  0xe3   : > { %4967 = vmatmul.mubr.msk.f32.gmra.mrb[26].mxu0 %vm240_vm0, %v5939_v53  ;;  %4737 = vmatprep.mubr.msk.f32.mxu1 %vm240_vm0, %v6690_v55  ;;  %v4141_v53 = vld [vmem:[%s5624_s21 + $0x1a0] sm:$0xff] }
  0xe4   : > { %4969 = vmatprep.mubr.msk.f32.mxu0 %vm240_vm0, %v6223_v50  ;;  %v6695_v50 = vld [vmem:[#allocation31_spill] sm:$0xff] }
  0xe6   : > { %4738 = vmatmul.mubr.msk.f32.gmra.mrb[12].mxu1 %vm240_vm0, %v6692_v26 }
  0xe7   : > { %4970 = vmatmul.mubr.msk.f32.gmra.mrb[28].mxu0 %vm240_vm0, %v6234_v42  ;;  %4740 = vmatprep.mubr.msk.f32.mxu1 %vm240_vm0, %v6693_v46  ;;  %v6696_v42 = vld [vmem:[#allocation33_spill] sm:$0xff] }
  0xe8   : > { %4972 = vmatprep.mubr.msk.f32.mxu0 %vm240_vm0, %v4140_v29  ;;  %v6713_v29 = vld [vmem:[#allocation17_spill] sm:$0xff] }
  0xea   : > { %4741 = vmatmul.mubr.msk.f32.gmra.mrb[14].mxu1 %vm240_vm0, %v6694_v13 }
  0xeb   : > { %4973 = vmatmul.mubr.msk.f32.gmra.mrb[30].mxu0 %vm240_vm0, %v4141_v53  ;;  %4743 = vmatprep.mubr.msk.f32.mxu1 %vm240_vm0, %v6695_v50  ;;  %v6359_v53 = vld [vmem:[%s5624_s21 + $0x181] sm:$0xff] }
  0xec   : > { %4979 = vmatprep.mubr.msk.f32.mxu0 %vm240_vm0, %v5645_v17  ;;  %v6697_v17 = vld [vmem:[#allocation15_spill] sm:$0xff] }
  0xee   : > { %4744 = vmatmul.mubr.msk.f32.gmra.mrb[16].mxu1 %vm240_vm0, %v5944_v18 }
  0xef   : > { %4980 = vmatmul.mubr.msk.f32.vlgmr.msra.gmra.mrb[0].mxu0 %vm240_vm0, %v5658_v19  ;;  %4746 = vmatprep.mubr.msk.f32.mxu1 %vm240_vm0, %v6696_v42  ;;  %v6698_v19 = vld [vmem:[#allocation34_spill] sm:$0xff] }
  0xf0   : > { %4982 = vmatprep.mubr.msk.f32.mxu0 %vm240_vm0, %v5664_v21  ;;  %5114 = vmatpush3.bf16.msra.mxu0 %v6073_v14  ;;  %v6699_v21 = vld [vmem:[#allocation35_spill] sm:$0xff]  ;;  %v6714_v14 = vld [vmem:[#allocation18_spill] sm:$0xff] }
  0xf2   : > { %4747 = vmatmul.mubr.msk.f32.gmra.mrb[18].mxu1 %vm240_vm0, %v5959_v52 }
  0xf3   : > { %4983 = vmatmul.mubr.msk.f32.gmra.mrb[2].mxu0 %vm240_vm0, %v5678_v23  ;;  %4749 = vmatprep.mubr.msk.f32.mxu1 %vm240_vm0, %v5962_v10  ;;  %v6700_v23 = vld [vmem:[#allocation36_spill] sm:$0xff] }
  0xf4   : > { %4985 = vmatprep.mubr.msk.f32.mxu0 %vm240_vm0, %v5684_v25  ;;  %v6701_v25 = vld [vmem:[#allocation37_spill] sm:$0xff] }
  0xf6   : > { %4750 = vmatmul.mubr.msk.f32.gmra.mrb[20].mxu1 %vm240_vm0, %v5975_v16 }
  0xf7   : > { %4986 = vmatmul.mubr.msk.f32.gmra.mrb[4].mxu0 %vm240_vm0, %v5698_v30  ;;  %4752 = vmatprep.mubr.msk.f32.mxu1 %vm240_vm0, %v5978_v27  ;;  %v6702_v30 = vld [vmem:[#allocation38_spill] sm:$0xff] }
  0xf8   : > { %4988 = vmatprep.mubr.msk.f32.mxu0 %vm240_vm0, %v5704_v32  ;;  %v6703_v32 = vld [vmem:[#allocation39_spill] sm:$0xff] }
  0xfa   : > { %4753 = vmatmul.mubr.msk.f32.gmra.mrb[22].mxu1 %vm240_vm0, %v5990_v6 }
  0xfb   : > { %4989 = vmatmul.mubr.msk.f32.gmra.mrb[6].mxu0 %vm240_vm0, %v5718_v34  ;;  %4755 = vmatprep.mubr.msk.f32.mxu1 %vm240_vm0, %v5993_v43  ;;  %v6704_v34 = vld [vmem:[#allocation40_spill] sm:$0xff] }
  0xfc   : > { %4991 = vmatprep.mubr.msk.f32.mxu0 %vm240_vm0, %v6697_v17  ;;  %v6715_v17 = vld [vmem:[#allocation19_spill] sm:$0xff] }
  0xfe   : > { %4756 = vmatmul.mubr.msk.f32.gmra.mrb[24].mxu1 %vm240_vm0, %v6698_v19 }
  0xff   : > { %4992 = vmatmul.mubr.msk.f32.gmra.mrb[8].mxu0 %vm240_vm0, %v5738_v38  ;;  %4758 = vmatprep.mubr.msk.f32.mxu1 %vm240_vm0, %v6699_v21  ;;  %v6705_v38 = vld [vmem:[#allocation8_spill] sm:$0xff] }
 0x100   : > { %4994 = vmatprep.mubr.msk.f32.mxu0 %vm240_vm0, %v5744_v41  ;;  %v6706_v41 = vld [vmem:[#allocation9_spill] sm:$0xff] }
 0x102   : > { %4759 = vmatmul.mubr.msk.f32.gmra.mrb[26].mxu1 %vm240_vm0, %v6700_v23 }
 0x103   : > { %4995 = vmatmul.mubr.msk.f32.gmra.mrb[10].mxu0 %vm240_vm0, %v5760_v45  ;;  %4761 = vmatprep.mubr.msk.f32.mxu1 %vm240_vm0, %v6701_v25  ;;  %v6707_v45 = vld [vmem:[#allocation10_spill] sm:$0xff] }
 0x104   : > { %4997 = vmatprep.mubr.msk.f32.mxu0 %vm240_vm0, %v5767_v47  ;;  %v6711_v47 = vld [vmem:[#allocation14_spill] sm:$0xff] }
 0x106   : > { %4762 = vmatmul.mubr.msk.f32.gmra.mrb[28].mxu1 %vm240_vm0, %v6702_v30 }
 0x107   : > { %4998 = vmatmul.mubr.msk.f32.gmra.mrb[12].mxu0 %vm240_vm0, %v5781_v49  ;;  %4764 = vmatprep.mubr.msk.f32.mxu1 %vm240_vm0, %v6703_v32  ;;  %v6712_v49 = vld [vmem:[#allocation16_spill] sm:$0xff] }
 0x108   : > { %5000 = vmatprep.mubr.msk.f32.mxu0 %vm240_vm0, %v6071_v40 }
 0x10a   : > { %4765 = vmatmul.mubr.msk.f32.gmra.mrb[30].mxu1 %vm240_vm0, %v6704_v34 }
 0x10b   : > { %5001 = vmatmul.mubr.msk.f32.gmra.mrb[14].mxu0 %vm240_vm0, %v6082_v15  ;;  %4771 = vmatprep.mubr.msk.f32.mxu1 %vm240_vm0, %v6705_v38  ;;  %v6370_v38 = vld [vmem:[%s5624_s21 + $0x189] sm:$0xff] }
 0x10c   : > { %5003 = vmatprep.mubr.msk.f32.mxu0 %vm240_vm0, %v6088_v36 }
 0x10e   : > { %4772 = vmatmul.mubr.msk.f32.vlgmr.msra.gmra.mrb[0].mxu1 %vm240_vm0, %v6706_v41  ;;  %v4204_v41 = vld [vmem:[%s5624_s21 + $0x199] sm:$0xff] }
 0x10f   : > { %5004 = vmatmul.mubr.msk.f32.gmra.mrb[16].mxu0 %vm240_vm0, %v6098_v12  ;;  %5116 = vmatpush3.bf16.msra.mxu1 %v5630_v7  ;;  %v6708_v7 = vld [vmem:[#allocation11_spill] sm:$0xff] }
 0x110   : > { %4774 = vmatprep.mubr.msk.f32.mxu1 %vm240_vm0, %v5661_v20  ;;  %5006 = vmatprep.mubr.msk.f32.mxu0 %vm240_vm0, %v6103_v58  ;;  %v6709_v20 = vld [vmem:[#allocation12_spill] sm:$0xff] }
 0x112   : > { %4775 = vmatmul.mubr.msk.f32.gmra.mrb[2].mxu1 %vm240_vm0, %v5673_v22  ;;  %v6710_v22 = vld [vmem:[#allocation13_spill] sm:$0xff] }
 0x113   : > { %5007 = vmatmul.mubr.msk.f32.gmra.mrb[18].mxu0 %vm240_vm0, %v6112_v28  ;;  %4777 = vmatprep.mubr.msk.f32.mxu1 %vm240_vm0, %v6707_v45  ;;  %v6716_v45 = vld [vmem:[#allocation20_spill] sm:$0xff] }
 0x114   : > { %5009 = vmatprep.mubr.msk.f32.mxu0 %vm240_vm0, %v6117_v24 }
 0x116   : > { %4778 = vmatmul.mubr.msk.f32.gmra.mrb[4].mxu1 %vm240_vm0, %v6708_v7  ;;  %v6717_v7 = vld [vmem:[#allocation21_spill] sm:$0xff] }
 0x117   : > { %5010 = vmatmul.mubr.msk.f32.gmra.mrb[20].mxu0 %vm240_vm0, %v6126_v33  ;;  %4780 = vmatprep.mubr.msk.f32.mxu1 %vm240_vm0, %v6709_v20  ;;  %v4205_v20 = vld [vmem:[%s5624_s21 + $0x1a1] sm:$0xff] }
 0x118   : > { %5012 = vmatprep.mubr.msk.f32.mxu0 %vm240_vm0, %v6131_v31 }
 0x11a   : > { %4781 = vmatmul.mubr.msk.f32.gmra.mrb[6].mxu1 %vm240_vm0, %v6710_v22 }
 0x11b   : > { %5013 = vmatmul.mubr.msk.f32.gmra.mrb[22].mxu0 %vm240_vm0, %v6140_v37  ;;  %4783 = vmatprep.mubr.msk.f32.mxu1 %vm240_vm0, %v6711_v47 }
 0x11c   : > { %5015 = vmatprep.mubr.msk.f32.mxu0 %vm240_vm0, %v6145_v35 }
 0x11e   : > { %4784 = vmatmul.mubr.msk.f32.gmra.mrb[8].mxu1 %vm240_vm0, %v6712_v49 }
 0x11f   : > { %5016 = vmatmul.mubr.msk.f32.gmra.mrb[24].mxu0 %vm240_vm0, %v6154_v44  ;;  %4786 = vmatprep.mubr.msk.f32.mxu1 %vm240_vm0, %v6713_v29 }
 0x120   : > { %5018 = vmatprep.mubr.msk.f32.mxu0 %vm240_vm0, %v6159_v39 }
 0x122   : > { %4787 = vmatmul.mubr.msk.f32.gmra.mrb[10].mxu1 %vm240_vm0, %v6714_v14 }
 0x123   : > { %5019 = vmatmul.mubr.msk.f32.gmra.mrb[26].mxu0 %vm240_vm0, %v6168_v48  ;;  %4789 = vmatprep.mubr.msk.f32.mxu1 %vm240_vm0, %v6715_v17 }
 0x124   : > { %5021 = vmatprep.mubr.msk.f32.mxu0 %vm240_vm0, %v6359_v53 }
 0x126   : > { %4790 = vmatmul.mubr.msk.f32.gmra.mrb[12].mxu1 %vm240_vm0, %v6716_v45 }
 0x127   : > { %5022 = vmatmul.mubr.msk.f32.gmra.mrb[28].mxu0 %vm240_vm0, %v6370_v38  ;;  %4792 = vmatprep.mubr.msk.f32.mxu1 %vm240_vm0, %v6717_v7 }
 0x128   : > { %5024 = vmatprep.mubr.msk.f32.mxu0 %vm240_vm0, %v4204_v41 }
 0x12a   : > { %4793 = vmatmul.mubr.msk.f32.gmra.mrb[14].mxu1 %vm240_vm0, %v5796_v54  ;;  %v6718_v54 = vld [vmem:[#allocation24_spill] sm:$0xff] }
 0x12b   : > { %5025 = vmatmul.mubr.msk.f32.gmra.mrb[30].mxu0 %vm240_vm0, %v4205_v20  ;;  %4795 = vmatprep.mubr.msk.f32.mxu1 %vm240_vm0, %v5804_v56  ;;  %v6719_v56 = vld [vmem:[#allocation26_spill] sm:$0xff] }
 0x12c   : > { %5031 = vmatprep.mubr.msk.f32.mxu0 %vm240_vm0, %v5807_v57  ;;  %v6720_v57 = vld [vmem:[#allocation28_spill] sm:$0xff] }
 0x12e   : > { %4796 = vmatmul.mubr.msk.f32.gmra.mrb[16].mxu1 %vm240_vm0, %v5818_v59  ;;  %v6721_v59 = vld [vmem:[#allocation30_spill] sm:$0xff] }
 0x12f   : > { %5032 = vmatmul.mubr.msk.f32.vlgmr.msra.gmra.mrb[0].mxu0 %vm240_vm0, %v5823_v60  ;;  %4798 = vmatprep.mubr.msk.f32.mxu1 %vm240_vm0, %v5826_v61  ;;  %v6722_v60 = vld [vmem:[#allocation32_spill] sm:$0xff]  ;;  %v6723_v61 = vld [vmem:[#allocation43_spill] sm:$0xff] }
 0x130   : > { %5034 = vmatprep.mubr.msk.f32.mxu0 %vm240_vm0, %v5829_v62  ;;  %v6724_v62 = vld [vmem:[#allocation22_spill] sm:$0xff] }
 0x132   : > { %4799 = vmatmul.mubr.msk.f32.gmra.mrb[18].mxu1 %vm240_vm0, %v5839_v63 }
 0x133   : > { %5035 = vmatmul.mubr.msk.f32.gmra.mrb[2].mxu0 %vm240_vm0, %v5844_v0  ;;  %4801 = vmatprep.mubr.msk.f32.mxu1 %vm240_vm0, %v5847_v1 }
 0x134   : > { %5037 = vmatprep.mubr.msk.f32.mxu0 %vm240_vm0, %v5850_v2 }
 0x136   : > { %4802 = vmatmul.mubr.msk.f32.gmra.mrb[20].mxu1 %vm240_vm0, %v5859_v3 }
 0x137   : > { %5038 = vmatmul.mubr.msk.f32.gmra.mrb[4].mxu0 %vm240_vm0, %v5864_v4  ;;  %4804 = vmatprep.mubr.msk.f32.mxu1 %vm240_vm0, %v5867_v5 }
 0x138   : > { %5040 = vmatprep.mubr.msk.f32.mxu0 %vm240_vm0, %v5870_v8 }
 0x13a   : > { %4805 = vmatmul.mubr.msk.f32.gmra.mrb[22].mxu1 %vm240_vm0, %v5879_v9 }
 0x13b   : > { %5041 = vmatmul.mubr.msk.f32.gmra.mrb[6].mxu0 %vm240_vm0, %v6689_v51  ;;  %4807 = vmatprep.mubr.msk.f32.mxu1 %vm240_vm0, %v5887_v11 }
 0x13c   : > { %5043 = vmatprep.mubr.msk.f32.mxu0 %vm240_vm0, %v6690_v55 }
 0x13e   : > { %4808 = vmatmul.mubr.msk.f32.gmra.mrb[24].mxu1 %vm240_vm0, %v6718_v54 }
 0x13f   : > { %5044 = vmatmul.mubr.msk.f32.gmra.mrb[8].mxu0 %vm240_vm0, %v6692_v26  ;;  %4810 = vmatprep.mubr.msk.f32.mxu1 %vm240_vm0, %v6719_v56 }
 0x140   : > { %5046 = vmatprep.mubr.msk.f32.mxu0 %vm240_vm0, %v6693_v46 }
 0x142   : > { %4811 = vmatmul.mubr.msk.f32.gmra.mrb[26].mxu1 %vm240_vm0, %v6720_v57 }
 0x143   : > { %5047 = vmatmul.mubr.msk.f32.gmra.mrb[10].mxu0 %vm240_vm0, %v6694_v13  ;;  %4813 = vmatprep.mubr.msk.f32.mxu1 %vm240_vm0, %v6721_v59 }
 0x144   : > { %5049 = vmatprep.mubr.msk.f32.mxu0 %vm240_vm0, %v6695_v50 }
 0x146   : > { %4814 = vmatmul.mubr.msk.f32.gmra.mrb[28].mxu1 %vm240_vm0, %v6722_v60 }
 0x147   : > { %5050 = vmatmul.mubr.msk.f32.gmra.mrb[12].mxu0 %vm240_vm0, %v5944_v18  ;;  %4816 = vmatprep.mubr.msk.f32.mxu1 %vm240_vm0, %v6723_v61  ;;  %v6725_v18 = vld [vmem:[#allocation41_spill] sm:$0xff] }
 0x148   : > { %5052 = vmatprep.mubr.msk.f32.mxu0 %vm240_vm0, %v6696_v42 }
 0x14a   : > { %4817 = vmatmul.mubr.msk.f32.gmra.mrb[30].mxu1 %vm240_vm0, %v6724_v62 }
 0x14b   : > { %5053 = vmatmul.mubr.msk.f32.gmra.mrb[14].mxu0 %vm240_vm0, %v5959_v52  ;;  %4847 = vmatprep.mubr.msk.f32.mxu1 %vm240_vm0, %v6071_v40 }
 0x14c   : > { %5055 = vmatprep.mubr.msk.f32.mxu0 %vm240_vm0, %v5962_v10  ;;  %v6512_v10 = vld [vmem:[#allocation4] ss:$0 sm:$0xff] }
 0x14e   : > { %4848 = vmatmul.mubr.msk.f32.vlgmr.msra.gmra.mrb[16].mxu1 %vm240_vm0, %v6082_v15 }
 0x14f   : > { %5056 = vmatmul.mubr.msk.f32.gmra.mrb[16].mxu0 %vm240_vm0, %v5975_v16  ;;  %4850 = vmatprep.mubr.msk.f32.mxu1 %vm240_vm0, %v6088_v36 }
 0x150   : > { %5058 = vmatprep.mubr.msk.f32.mxu0 %vm240_vm0, %v5978_v27 }
 0x152   : > { %4851 = vmatmul.mubr.msk.f32.gmra.mrb[18].mxu1 %vm240_vm0, %v6098_v12 }
 0x153   : > { %5059 = vmatmul.mubr.msk.f32.gmra.mrb[18].mxu0 %vm240_vm0, %v5990_v6  ;;  %4853 = vmatprep.mubr.msk.f32.mxu1 %vm240_vm0, %v6103_v58 }
 0x154   : > { %5061 = vmatprep.mubr.msk.f32.mxu0 %vm240_vm0, %v5993_v43 }
 0x156   : > { %4854 = vmatmul.mubr.msk.f32.gmra.mrb[20].mxu1 %vm240_vm0, %v6112_v28  ;;  %v6726_v28 = vld [vmem:[#allocation42_spill] sm:$0xff] }
 0x157   : > { %5062 = vmatmul.mubr.msk.f32.gmra.mrb[20].mxu0 %vm240_vm0, %v6698_v19  ;;  %4856 = vmatprep.mubr.msk.f32.mxu1 %vm240_vm0, %v6117_v24  ;;  %v4268_v24 = vld [vmem:[%s5624_s21 + $0x19a] sm:$0xff] }
 0x158   : > { %5064 = vmatprep.mubr.msk.f32.mxu0 %vm240_vm0, %v6699_v21 }
 0x15a   : > { %4857 = vmatmul.mubr.msk.f32.gmra.mrb[22].mxu1 %vm240_vm0, %v6126_v33 }
 0x15b   : > { %5065 = vmatmul.mubr.msk.f32.gmra.mrb[22].mxu0 %vm240_vm0, %v6700_v23  ;;  %4859 = vmatprep.mubr.msk.f32.mxu1 %vm240_vm0, %v6131_v31  ;;  %v4269_v31 = vld [vmem:[%s5624_s21 + $0x1a2] sm:$0xff] }
 0x15c   : > { %5067 = vmatprep.mubr.msk.f32.mxu0 %vm240_vm0, %v6701_v25 }
 0x15e   : > { %4860 = vmatmul.mubr.msk.f32.gmra.mrb[24].mxu1 %vm240_vm0, %v6140_v37 }
 0x15f   : > { %5068 = vmatmul.mubr.msk.f32.gmra.mrb[24].mxu0 %vm240_vm0, %v6702_v30  ;;  %4862 = vmatprep.mubr.msk.f32.mxu1 %vm240_vm0, %v6145_v35 }
 0x160   : > { %5070 = vmatprep.mubr.msk.f32.mxu0 %vm240_vm0, %v6703_v32 }
 0x162   : > { %4863 = vmatmul.mubr.msk.f32.gmra.mrb[26].mxu1 %vm240_vm0, %v6154_v44 }
 0x163   : > { %5071 = vmatmul.mubr.msk.f32.gmra.mrb[26].mxu0 %vm240_vm0, %v6704_v34  ;;  %4865 = vmatprep.mubr.msk.f32.mxu1 %vm240_vm0, %v6159_v39 }
 0x164   : > { %5073 = vmatprep.mubr.msk.f32.mxu0 %vm240_vm0, %v6725_v18 }
 0x166   : > { %4866 = vmatmul.mubr.msk.f32.gmra.mrb[28].mxu1 %vm240_vm0, %v6168_v48 }
 0x167   : > { %5074 = vmatmul.mubr.msk.f32.gmra.mrb[28].mxu0 %vm240_vm0, %v6726_v28  ;;  %4868 = vmatprep.mubr.msk.f32.mxu1 %vm240_vm0, %v6359_v53 }
 0x168   : > { %5076 = vmatprep.mubr.msk.f32.mxu0 %vm240_vm0, %v4268_v24 }
 0x16a   : > { %4869 = vmatmul.mubr.msk.f32.gmra.mrb[30].mxu1 %vm240_vm0, %v6370_v38 }
 0x16b   : > { %5077 = vmatmul.mubr.msk.f32.gmra.mrb[30].mxu0 %vm240_vm0, %v4269_v31 }
 0x1e1   : > { %v4773_v33 = vpop.f32.mrb[0].mxu1 }
 0x1e2   : > { %v1568_v35 = vpop.f32.mrb[1].mxu1  ;;  %v5117_v13 = vadd.f32 %v4773_v33, %v6512_v10 }
 0x1e3   : > { %v5119_v26 = vadd.f32 %v6512_v10, %v1568_v35 }
 0x1e5   : > { %v4776_v37 = vpop.f32.mrb[2].mxu1 }
 0x1e6   : > { %v1578_v39 = vpop.f32.mrb[3].mxu1  ;;  %v5121_v43 = vadd.f32 %v4776_v37, %v6512_v10 }
 0x1e7   : > { %v5123_v15 = vadd.f32 %v6512_v10, %v1578_v39 }
 0x1e9   : > { %v4779_v44 = vpop.f32.mrb[4].mxu1 }
 0x1ea   : > { %v1588_v48 = vpop.f32.mrb[5].mxu1  ;;  %v5125_v46 = vadd.f32 %v4779_v44, %v6512_v10 }
 0x1eb   : > { %v5127_v50 = vadd.f32 %v6512_v10, %v1588_v48 }
 0x1ed   : > { %v4782_v63 = vpop.f32.mrb[6].mxu1 }
 0x1ee   : > { %v1598_v0 = vpop.f32.mrb[7].mxu1  ;;  %v5129_v21 = vadd.f32 %v4782_v63, %v6512_v10 }
 0x1ef   : > { %v5131_v23 = vadd.f32 %v6512_v10, %v1598_v0 }
 0x1f1   : > { %v4785_v1 = vpop.f32.mrb[8].mxu1 }
 0x1f2   : > { %v1608_v2 = vpop.f32.mrb[9].mxu1  ;;  %v5133_v22 = vadd.f32 %v4785_v1, %v6512_v10 }
 0x1f3   : > { %v5135_v47 = vadd.f32 %v6512_v10, %v1608_v2 }
 0x1f5   : > { %v4788_v3 = vpop.f32.mrb[10].mxu1 }
 0x1f6   : > { %v1618_v4 = vpop.f32.mrb[11].mxu1  ;;  %v5137_v17 = vadd.f32 %v4788_v3, %v6512_v10 }
 0x1f7   : > { %v5139_v38 = vadd.f32 %v6512_v10, %v1618_v4 }
 0x1f9   : > { %v4791_v5 = vpop.f32.mrb[12].mxu1 }
 0x1fa   : > { %v1628_v8 = vpop.f32.mrb[13].mxu1  ;;  %v5141_v54 = vadd.f32 %v4791_v5, %v6512_v10 }
 0x1fb   : > { %v5143_v56 = vadd.f32 %v6512_v10, %v1628_v8 }
 0x1fd   : > { %v4794_v9 = vpop.f32.mrb[14].mxu1 }
 0x1fe   : > { %v1638_v11 = vpop.f32.mrb[15].mxu1  ;;  %v5145_v62 = vadd.f32 %v4794_v9, %v6512_v10 }
 0x1ff   : > { %v5147_v18 = vadd.f32 %v6512_v10, %v1638_v11 }
 0x202   : > { %v5033_v27 = vpop.f32.mrb[0].mxu0 }
 0x203   : > { %v5118_v52 = vadd.f32 %v5117_v13, %v5033_v27  ;;  %v3509_v16 = vpop.f32.mrb[1].mxu0 }
 0x204   : > { %v5120_v6 = vadd.f32 %v5119_v26, %v3509_v16 }
 0x205   : > { %3701 = vst [vmem:[%s6520_s25 + $0x8] sm:$0xff] %v5118_v52 }
 0x206   : > { %3700 = vst [vmem:[%s6520_s25] sm:$0xff] %v5120_v6  ;;  %v5036_v40 = vpop.f32.mrb[2].mxu0 }
 0x207   : > { %v5122_v36 = vadd.f32 %v5121_v43, %v5036_v40  ;;  %v3519_v12 = vpop.f32.mrb[3].mxu0 }
 0x208   : > { %v5124_v58 = vadd.f32 %v5123_v15, %v3519_v12 }
 0x209   : > { %3703 = vst [vmem:[%s6520_s25 + $0x18] sm:$0xff] %v5122_v36 }
 0x20a   : > { %3702 = vst [vmem:[%s6520_s25 + $0x10] sm:$0xff] %v5124_v58  ;;  %v5039_v51 = vpop.f32.mrb[4].mxu0 }
 0x20b   : > { %v5126_v55 = vadd.f32 %v5125_v46, %v5039_v51  ;;  %v3529_v42 = vpop.f32.mrb[5].mxu0 }
 0x20c   : > { %v5128_v19 = vadd.f32 %v5127_v50, %v3529_v42 }
 0x20d   : > { %3705 = vst [vmem:[%s6520_s25 + $0x28] sm:$0xff] %v5126_v55 }
 0x20e   : > { %3704 = vst [vmem:[%s6520_s25 + $0x20] sm:$0xff] %v5128_v19  ;;  %v5042_v25 = vpop.f32.mrb[6].mxu0 }
 0x20f   : > { %v5130_v30 = vadd.f32 %v5129_v21, %v5042_v25  ;;  %v3539_v32 = vpop.f32.mrb[7].mxu0 }
 0x210   : > { %v5132_v34 = vadd.f32 %v5131_v23, %v3539_v32 }
 0x211   : > { %3707 = vst [vmem:[%s6520_s25 + $0x38] sm:$0xff] %v5130_v30 }
 0x212   : > { %3706 = vst [vmem:[%s6520_s25 + $0x30] sm:$0xff] %v5132_v34  ;;  %v5045_v49 = vpop.f32.mrb[8].mxu0 }
 0x213   : > { %v5134_v29 = vadd.f32 %v5133_v22, %v5045_v49  ;;  %v3549_v53 = vpop.f32.mrb[9].mxu0 }
 0x214   : > { %v5136_v14 = vadd.f32 %v5135_v47, %v3549_v53 }
 0x215   : > { %3709 = vst [vmem:[%s6520_s25 + $0x48] sm:$0xff] %v5134_v29 }
 0x216   : > { %3708 = vst [vmem:[%s6520_s25 + $0x40] sm:$0xff] %v5136_v14  ;;  %v5048_v41 = vpop.f32.mrb[10].mxu0 }
 0x217   : > { %v5138_v45 = vadd.f32 %v5137_v17, %v5048_v41  ;;  %v3559_v7 = vpop.f32.mrb[11].mxu0 }
 0x218   : > { %v5140_v20 = vadd.f32 %v5139_v38, %v3559_v7 }
 0x219   : > { %3711 = vst [vmem:[%s6520_s25 + $0x58] sm:$0xff] %v5138_v45 }
 0x21a   : > { %3710 = vst [vmem:[%s6520_s25 + $0x50] sm:$0xff] %v5140_v20  ;;  %v5051_v57 = vpop.f32.mrb[12].mxu0 }
 0x21b   : > { %v5142_v59 = vadd.f32 %v5141_v54, %v5051_v57  ;;  %v3569_v60 = vpop.f32.mrb[13].mxu0 }
 0x21c   : > { %v5144_v61 = vadd.f32 %v5143_v56, %v3569_v60 }
 0x21d   : > { %3713 = vst [vmem:[%s6520_s25 + $0x68] sm:$0xff] %v5142_v59 }
 0x21e   : > { %3712 = vst [vmem:[%s6520_s25 + $0x60] sm:$0xff] %v5144_v61  ;;  %v5054_v24 = vpop.f32.mrb[14].mxu0 }
 0x21f   : > { %v5146_v28 = vadd.f32 %v5145_v62, %v5054_v24  ;;  %v3579_v31 = vpop.f32.mrb[15].mxu0 }
 0x220   : > { %v5148_v33 = vadd.f32 %v5147_v18, %v3579_v31 }
 0x221   : > { %3715 = vst [vmem:[%s6520_s25 + $0x78] sm:$0xff] %v5146_v28  ;;  %v4849_v35 = vpop.f32.mrb[16].mxu1 }
 0x222   : > { %3714 = vst [vmem:[%s6520_s25 + $0x70] sm:$0xff] %v5148_v33  ;;  %v5149_v37 = vadd.f32 %v4849_v35, %v6512_v10  ;;  %v5057_v39 = vpop.f32.mrb[16].mxu0  ;;  %v2036_v44 = vpop.f32.mrb[17].mxu1 }
 0x223   : > { %v5151_v48 = vadd.f32 %v6512_v10, %v2036_v44  ;;  %v3589_v63 = vpop.f32.mrb[17].mxu0 }
 0x224   : > { %v5150_v0 = vadd.f32 %v5149_v37, %v5057_v39 }
 0x225   : > { %v5152_v1 = vadd.f32 %v5151_v48, %v3589_v63  ;;  %v4852_v2 = vpop.f32.mrb[18].mxu1 }
 0x226   : > { %3717 = vst [vmem:[%s6520_s25 + $0x88] sm:$0xff] %v5150_v0  ;;  %v5153_v3 = vadd.f32 %v4852_v2, %v6512_v10  ;;  %v5060_v4 = vpop.f32.mrb[18].mxu0  ;;  %v2046_v5 = vpop.f32.mrb[19].mxu1 }
 0x227   : > { %3716 = vst [vmem:[%s6520_s25 + $0x80] sm:$0xff] %v5152_v1  ;;  %v5155_v8 = vadd.f32 %v6512_v10, %v2046_v5  ;;  %v3599_v9 = vpop.f32.mrb[19].mxu0 }
 0x228   : > { %v5154_v11 = vadd.f32 %v5153_v3, %v5060_v4 }
 0x229   : > { %v5156_v13 = vadd.f32 %v5155_v8, %v3599_v9  ;;  %v4855_v26 = vpop.f32.mrb[20].mxu1 }
 0x22a   : > { %3719 = vst [vmem:[%s6520_s25 + $0x98] sm:$0xff] %v5154_v11  ;;  %v5157_v27 = vadd.f32 %v4855_v26, %v6512_v10  ;;  %v5063_v52 = vpop.f32.mrb[20].mxu0  ;;  %v2056_v16 = vpop.f32.mrb[21].mxu1 }
 0x22b   : > { %3718 = vst [vmem:[%s6520_s25 + $0x90] sm:$0xff] %v5156_v13  ;;  %v5159_v6 = vadd.f32 %v6512_v10, %v2056_v16  ;;  %v3609_v43 = vpop.f32.mrb[21].mxu0 }
 0x22c   : > { %v5158_v15 = vadd.f32 %v5157_v27, %v5063_v52 }
 0x22d   : > { %v5160_v40 = vadd.f32 %v5159_v6, %v3609_v43  ;;  %v4858_v36 = vpop.f32.mrb[22].mxu1 }
 0x22e   : > { %3721 = vst [vmem:[%s6520_s25 + $0xa8] sm:$0xff] %v5158_v15  ;;  %v5161_v12 = vadd.f32 %v4858_v36, %v6512_v10  ;;  %v5066_v58 = vpop.f32.mrb[22].mxu0  ;;  %v2066_v46 = vpop.f32.mrb[23].mxu1 }
 0x22f   : > { %3720 = vst [vmem:[%s6520_s25 + $0xa0] sm:$0xff] %v5160_v40  ;;  %v5163_v50 = vadd.f32 %v6512_v10, %v2066_v46  ;;  %v3619_v51 = vpop.f32.mrb[23].mxu0 }
 0x230   : > { %v5162_v55 = vadd.f32 %v5161_v12, %v5066_v58 }
 0x231   : > { %v5164_v42 = vadd.f32 %v5163_v50, %v3619_v51  ;;  %v4861_v19 = vpop.f32.mrb[24].mxu1 }
 0x232   : > { %3723 = vst [vmem:[%s6520_s25 + $0xb8] sm:$0xff] %v5162_v55  ;;  %v5165_v21 = vadd.f32 %v4861_v19, %v6512_v10  ;;  %v5069_v23 = vpop.f32.mrb[24].mxu0  ;;  %v2076_v25 = vpop.f32.mrb[25].mxu1 }
 0x233   : > { %3722 = vst [vmem:[%s6520_s25 + $0xb0] sm:$0xff] %v5164_v42  ;;  %v5167_v30 = vadd.f32 %v6512_v10, %v2076_v25  ;;  %v3629_v32 = vpop.f32.mrb[25].mxu0 }
 0x234   : > { %v5166_v34 = vadd.f32 %v5165_v21, %v5069_v23 }
 0x235   : > { %v5168_v22 = vadd.f32 %v5167_v30, %v3629_v32  ;;  %v4864_v47 = vpop.f32.mrb[26].mxu1 }
 0x236   : > { %3725 = vst [vmem:[%s6520_s25 + $0xc8] sm:$0xff] %v5166_v34  ;;  %v5169_v49 = vadd.f32 %v4864_v47, %v6512_v10  ;;  %v5072_v29 = vpop.f32.mrb[26].mxu0  ;;  %v2086_v53 = vpop.f32.mrb[27].mxu1 }
 0x237   : > { %3724 = vst [vmem:[%s6520_s25 + $0xc0] sm:$0xff] %v5168_v22  ;;  %v5171_v14 = vadd.f32 %v6512_v10, %v2086_v53  ;;  %v3639_v17 = vpop.f32.mrb[27].mxu0 }
 0x238   : > { %v5170_v38 = vadd.f32 %v5169_v49, %v5072_v29 }
 0x239   : > { %v5172_v41 = vadd.f32 %v5171_v14, %v3639_v17  ;;  %v4867_v45 = vpop.f32.mrb[28].mxu1 }
 0x23a   : > { %3727 = vst [vmem:[%s6520_s25 + $0xd8] sm:$0xff] %v5170_v38  ;;  %v5173_v7 = vadd.f32 %v4867_v45, %v6512_v10  ;;  %v5075_v20 = vpop.f32.mrb[28].mxu0  ;;  %v2096_v54 = vpop.f32.mrb[29].mxu1 }
 0x23b   : > { %3726 = vst [vmem:[%s6520_s25 + $0xd0] sm:$0xff] %v5172_v41  ;;  %v5175_v56 = vadd.f32 %v6512_v10, %v2096_v54  ;;  %v3649_v57 = vpop.f32.mrb[29].mxu0 }
 0x23c   : > { %v5174_v59 = vadd.f32 %v5173_v7, %v5075_v20 }
 0x23d   : > { %v5176_v60 = vadd.f32 %v5175_v56, %v3649_v57  ;;  %v4870_v61 = vpop.f32.mrb[30].mxu1 }
 0x23e   : > { %3729 = vst [vmem:[%s6520_s25 + $0xe8] sm:$0xff] %v5174_v59  ;;  %v5177_v62 = vadd.f32 %v4870_v61, %v6512_v10  ;;  %v5078_v18 = vpop.f32.mrb[30].mxu0  ;;  %v2106_v24 = vpop.f32.mrb[31].mxu1 }
 0x23f   : > { %3728 = vst [vmem:[%s6520_s25 + $0xe0] sm:$0xff] %v5176_v60  ;;  %v5179_v28 = vadd.f32 %v6512_v10, %v2106_v24  ;;  %v3659_v31 = vpop.f32.mrb[31].mxu0 }
 0x240   : > { %v5178_v33 = vadd.f32 %v5177_v62, %v5078_v18 }
 0x241   : > { %v5180_v35 = vadd.f32 %v5179_v28, %v3659_v31 }
 0x242   : > { %3731 = vst [vmem:[%s6520_s25 + $0xf8] sm:$0xff] %v5178_v33 }
 0x243   : > { %3730 = vst [vmem:[%s6520_s25 + $0xf0] sm:$0xff] %v5180_v35 }
 0x244 PF: > { %s15_s12 = sadd.s32 1, %s5507_s12  }
 0x245   : > { %p12_p5 = scmp.ge.s32.totalorder %s15_s12, 4  }
 0x247   :  { %14 = sbr.rel (!%p12_p5) target bundleno = 2 (0x2), region = 81 }
 0x24e   :  { %3753 = vsyncpa [#allocation3], 1 }
 0x24f   :  { %3755 = vsyncpa [#allocation3 + $0x1], 1 }
 0x250   :  { %3756 = vsyncpa [#allocation5], 1 }

</bundles_post_ra>
